<compile_context>
chip_gen: v7x
topology: tpu7x:2x2x1
jax: 0.10.0
libtpu: 0.0.40
codegen_flags: <defaults>
</compile_context>

<pallas_src>
import numpy as np
import jax
import jax.numpy as jnp
from jax import lax
from jax.experimental import pallas as pl
from jax.experimental.pallas import tpu as pltpu


def _round_up(x, m):
    return ((x + m - 1) // m) * m


def _stage_geom(d):
    """Static geometry for one 'same' 3x3x3 conv stage on a cubic volume.

    Line layout: row index = dp*Hp + hp over the zero-padded (D+2, H+2) plane,
    lane index = wp*C + c over the padded W line and channels.  A (kd, kh) tap
    pair is a pure row shift of kd*Hp + kh; the kw taps are folded into a
    block-banded expanded weight, so the conv is 9 lane-dense matmuls
    (K = Wp*Cin, N = W*Cout) accumulated in registers.  Rows whose hp >= H
    decode to invalid outputs but are never read downstream.
    """
    hp = d + 2                                     # padded H (row stride of d)
    wp = d + 2                                     # padded W (lane stride of c)
    q = _round_up((d - 1) * hp + (d - 1) + 1, 8)   # conv-output rows (incl. garbage)
    shifts = tuple(kd * hp + kh for kd in range(3) for kh in range(3))
    rows = _round_up(max((d + 2) * hp, q + shifts[-1]), 8)  # input rows + slack
    return dict(d=d, hp=hp, wp=wp, q=q, shifts=shifts, rows=rows)


def _make_fused_kernel(g1, g2, c_in, c1, c2):
    d1, hp1 = g1["d"], g1["hp"]
    d2, hp2 = g2["d"], g2["hp"]          # conv2 spatial (= d1 // 2)
    d3 = d2 // 2                         # spatial after pool2
    lanes1 = d1 * c1                     # y1 lane width (w*C1 + co) -> 128 here
    lanes2 = d2 * c2                     # y2 lane width (w*C2 + co) -> 128 here

    def kernel(x_ref, w1_ref, b1_ref, w2_ref, b2_ref,
               wf1_ref, bf1_ref, wf2_ref, bf2_ref,
               out_ref, y1_ref, x2_ref, y2_ref):
        # ------------------- conv1 + bias + ReLU -------------------
        # 9 deep-K, lane-dense matmuls accumulated in registers; single store.
        acc = jnp.zeros((g1["q"], lanes1), jnp.float32)
        for g, s in enumerate(g1["shifts"]):
            acc = acc + jnp.dot(x_ref[pl.ds(s, g1["q"]), :], w1_ref[g],
                                preferred_element_type=jnp.float32)
        y1_ref[...] = jnp.maximum(acc + b1_ref[...], 0.0)

        # --- maxpool1 (2x2x2) fused with scatter into conv2's zero-padded
        #     line layout (the untouched zero rows/lanes ARE conv2's padding).
        x2_ref[...] = jnp.zeros_like(x2_ref)
        zpad = jnp.zeros((d2, c1), jnp.float32)          # W-padding lane blocks
        for dd in range(d2):
            base = 2 * dd * hp1
            r00 = y1_ref[pl.ds(base, d2, stride=2), :]           # (hh, lanes) dh=0, dd'=0
            r01 = y1_ref[pl.ds(base + 1, d2, stride=2), :]       # dh=1
            r10 = y1_ref[pl.ds(base + hp1, d2, stride=2), :]     # dd'=1
            r11 = y1_ref[pl.ds(base + hp1 + 1, d2, stride=2), :]
            m = jnp.maximum(jnp.maximum(r00, r01), jnp.maximum(r10, r11))  # (d2, lanes1)
            pieces = [zpad]
            for ww in range(d2):                     # w-direction: lane-block max
                lo = 2 * ww * c1
                pieces.append(jnp.maximum(m[:, lo:lo + c1], m[:, lo + c1:lo + 2 * c1]))
            pieces.append(zpad)
            # ONE full-width (d2, Wp2*C1) store per depth slice (no masked 1-row stores).
            x2_ref[pl.ds((dd + 1) * hp2 + 1, d2), :] = jnp.concatenate(pieces, axis=-1)

        # ------------------- conv2 + bias + ReLU -------------------
        acc2 = jnp.zeros((g2["q"], lanes2), jnp.float32)
        for g, s in enumerate(g2["shifts"]):
            acc2 = acc2 + jnp.dot(x2_ref[pl.ds(s, g2["q"]), :], w2_ref[g],
                                  preferred_element_type=jnp.float32)
        y2_ref[...] = jnp.maximum(acc2 + b2_ref[...], 0.0)

        # --------- maxpool2 + flatten + fc1 + ReLU + fc2 (all fused) ---------
        # Pool exactly like pool1, lane-concatenate the 8 pooled (1, C2) vectors
        # position-major/channel-minor (wf1 is pre-permuted to torch's NCDHW
        # flatten), then ONE K = 8*C2 matmul for fc1.
        pieces = []
        for dd in range(d3):
            base = 2 * dd * hp2
            r00 = y2_ref[pl.ds(base, d3, stride=2), :]
            r01 = y2_ref[pl.ds(base + 1, d3, stride=2), :]
            r10 = y2_ref[pl.ds(base + hp2, d3, stride=2), :]
            r11 = y2_ref[pl.ds(base + hp2 + 1, d3, stride=2), :]
            m = jnp.maximum(jnp.maximum(r00, r01), jnp.maximum(r10, r11))  # (d3, lanes2)
            for hh in range(d3):
                for ww in range(d3):
                    lo = 2 * ww * c2
                    pieces.append(jnp.maximum(m[hh:hh + 1, lo:lo + c2],
                                              m[hh:hh + 1, lo + c2:lo + 2 * c2]))
        flat = jnp.concatenate(pieces, axis=-1)                        # (1, n_pos*C2)
        flat8 = jnp.concatenate(                                       # MXU-friendly M=8
            [flat, jnp.zeros((7, flat.shape[-1]), jnp.float32)], axis=0)
        fc1 = jnp.dot(flat8, wf1_ref[...], preferred_element_type=jnp.float32)[0:1, :]
        h = jnp.maximum(fc1 + bf1_ref[...], 0.0)
        # fc2 (hidden -> 1) as VPU multiply + lane reduction (an MXU matmul with
        # N=1 would be maximally lane-sparse).
        out_ref[...] = (jnp.sum(h * wf2_ref[...], axis=-1, keepdims=True)
                        + bf2_ref[...])

    return kernel


# ----------------------------------------------------------------------------
# One-time weight packing (done OUTSIDE the forward, on host)
# ----------------------------------------------------------------------------
def pack_params(params):
    """Repack PyTorch-layout weights into the kernel's layouts (once)."""
    def pack_conv(wc, w_out):
        # (O, I, 3, 3, 3) -> (9, (w_out+2)*I, w_out*O): per (kd, kh), a block-banded
        # matrix mapping a padded input W-line (all channels) to an output W-line
        # (all channels); the kw taps live on the block diagonals.
        wc = np.asarray(wc, np.float32)
        o, i = wc.shape[0], wc.shape[1]
        wp = w_out + 2
        we = np.zeros((3, 3, wp, i, w_out, o), np.float32)
        for kd in range(3):
            for kh in range(3):
                for kw in range(3):
                    tap = wc[:, :, kd, kh, kw].T          # (I, O)
                    for w in range(w_out):
                        we[kd, kh, w + kw, :, w, :] = tap
        return jnp.asarray(we.reshape(9, wp * i, w_out * o))

    c1 = int(params["conv1_w"].shape[0])
    c2 = int(params["conv2_w"].shape[0])
    hidden, flat = (int(s) for s in params["fc1_w"].shape)
    n_pos = flat // c2
    d3 = int(round(n_pos ** (1.0 / 3.0)))
    assert d3 ** 3 == n_pos
    d = 4 * d3                                            # input spatial size

    # fc1 with torch's NCDHW flatten order folded in:
    #   wf1[p*C2 + c, o] = fc1_w[o, c*n_pos + p]
    wf1 = jnp.transpose(params["fc1_w"].reshape(hidden, c2, n_pos),
                        (2, 1, 0)).reshape(n_pos * c2, hidden)
    return dict(
        w1=pack_conv(params["conv1_w"], d),
        b1=jnp.tile(params["conv1_b"], (d,)).reshape(1, -1),          # lane = w*C1+co
        w2=pack_conv(params["conv2_w"], d // 2),
        b2=jnp.tile(params["conv2_b"], (d // 2,)).reshape(1, -1),     # lane = w*C2+co
        wf1=wf1, bf1=params["fc1_b"].reshape(1, -1),
        wf2=params["fc2_w"].reshape(1, -1), bf2=params["fc2_b"].reshape(1, 1),
    )


# ----------------------------------------------------------------------------
# Pafnucy forward (single fused pallas_call)
# ----------------------------------------------------------------------------
def pafnucy_forward(x_ncdhw, packed):
    """x_ncdhw: (N, C, D, H, W) float32 (PyTorch layout). Returns squeezed output."""
    n, c_in, d, h, w = x_ncdhw.shape
    assert d == h == w and d % 4 == 0
    g1 = _stage_geom(d)
    g2 = _stage_geom(d // 2)
    c1 = packed["b1"].shape[-1] // d
    c2 = packed["b2"].shape[-1] // (d // 2)
    hidden = packed["wf1"].shape[-1]
    k_fc1 = packed["wf1"].shape[0]
    assert k_fc1 == (d // 4) ** 3 * c2

    # One-shot layout prep of the tiny input: NCDHW -> padded "line" layout
    # (rows = padded (d, h) plane coords, lanes = padded W line x channels).
    x = jnp.transpose(x_ncdhw, (0, 2, 3, 4, 1))
    x = jnp.pad(x, ((0, 0), (1, 1), (1, 1), (1, 1), (0, 0)))
    x = x.reshape(n, (d + 2) * g1["hp"], g1["wp"] * c_in)
    x = jnp.pad(x, ((0, 0), (0, g1["rows"] - (d + 2) * g1["hp"]), (0, 0)))

    kernel = _make_fused_kernel(g1, g2, c_in, c1, c2)

    out = pl.pallas_call(
        kernel,
        out_shape=jax.ShapeDtypeStruct((n, 1, 1), jnp.float32),
        grid_spec=pltpu.PrefetchScalarGridSpec(
            num_scalar_prefetch=0,
            grid=(n,),
            in_specs=[
                pl.BlockSpec((None, g1["rows"], g1["wp"] * c_in), lambda i: (i, 0, 0)),
                pl.BlockSpec((9, g1["wp"] * c_in, d * c1), lambda i: (0, 0, 0)),
                pl.BlockSpec((1, d * c1), lambda i: (0, 0)),
                pl.BlockSpec((9, g2["wp"] * c1, (d // 2) * c2), lambda i: (0, 0, 0)),
                pl.BlockSpec((1, (d // 2) * c2), lambda i: (0, 0)),
                pl.BlockSpec((k_fc1, hidden), lambda i: (0, 0)),
                pl.BlockSpec((1, hidden), lambda i: (0, 0)),
                pl.BlockSpec((1, hidden), lambda i: (0, 0)),
                pl.BlockSpec((1, 1), lambda i: (0, 0)),
            ],
            out_specs=pl.BlockSpec((None, 1, 1), lambda i: (i, 0, 0)),
            scratch_shapes=[
                pltpu.VMEM((g1["q"], d * c1), jnp.float32),             # conv1 out (y1)
                pltpu.VMEM((g2["rows"], g2["wp"] * c1), jnp.float32),   # conv2 padded input
                pltpu.VMEM((g2["q"], (d // 2) * c2), jnp.float32),      # conv2 out (y2)
            ],
        ),
        # >=2 independent programs -> both v7x TensorCores get a sample each;
        # neutral on v5e/v6e (single TC).
        compiler_params=pltpu.CompilerParams(
            dimension_semantics=("parallel",)),
    )(x, packed["w1"], packed["b1"], packed["w2"], packed["b2"],
      packed["wf1"], packed["bf1"], packed["wf2"], packed["bf2"])

    # torch's .squeeze(): (N, 1) -> (N,) (collapses to a scalar when N == 1).
    return jnp.squeeze(out)


# ----------------------------------------------------------------------------
# Pure-JAX reference (correctness check for the Pallas path)
# ----------------------------------------------------------------------------
def pafnucy_reference(x, params):
    def conv(x, w, b):
        y = lax.conv_general_dilated(
            x, w, window_strides=(1, 1, 1), padding="SAME",
            dimension_numbers=("NCDHW", "OIDHW", "NCDHW"))
        return jnp.maximum(y + b[None, :, None, None, None], 0.0)

    def pool(x):
        return lax.reduce_window(
            x, -jnp.inf, lax.max,
            window_dimensions=(1, 1, 2, 2, 2),
            window_strides=(1, 1, 2, 2, 2), padding="VALID")

    x = pool(conv(x, params["conv1_w"], params["conv1_b"]))
    x = pool(conv(x, params["conv2_w"], params["conv2_b"]))
    x = x.reshape(x.shape[0], -1)
    x = jnp.maximum(x @ params["fc1_w"].T + params["fc1_b"], 0.0)
    x = x @ params["fc2_w"].T + params["fc2_b"]
    return jnp.squeeze(x)


# ----------------------------------------------------------------------------
# Deterministic parameter init (matches the PyTorch __init__ scheme:
# kaiming_normal_(fan_in, relu) for weights, const 0.1 / 1.0 for biases)
# ----------------------------------------------------------------------------
def init_params(key, c_in=4, c1=16, c2=32, spatial=8, hidden=64):
    k1, k2, k3, k4 = jax.random.split(key, 4)

    def kaiming(k, shape, fan_in):
        return jax.random.normal(k, shape, jnp.float32) * jnp.sqrt(2.0 / fan_in)

    flat = c2 * (spatial // 4) ** 3
    return dict(
        conv1_w=kaiming(k1, (c1, c_in, 3, 3, 3), c_in * 27),
        conv1_b=jnp.full((c1,), 0.1, jnp.float32),
        conv2_w=kaiming(k2, (c2, c1, 3, 3, 3), c1 * 27),
        conv2_b=jnp.full((c2,), 0.1, jnp.float32),
        fc1_w=kaiming(k3, (hidden, flat), flat),
        fc1_b=jnp.full((hidden,), 1.0, jnp.float32),
        fc2_w=kaiming(k4, (1, hidden), hidden),
        fc2_b=jnp.full((1,), 1.0, jnp.float32),
    )


if __name__ == "__main__":
    key = jax.random.PRNGKey(0)
    k_param, k_x = jax.random.split(key)

    N, C, S = 2, 4, 8
    params = init_params(k_param, c_in=C, spatial=S)
    x = jax.random.normal(k_x, (N, C, S, S, S), jnp.float32)  # NCDHW like PyTorch

    packed = pack_params(params)          # one-time weight repack (outside fwd)
    fwd = jax.jit(pafnucy_forward)

    out = jax.block_until_ready(fwd(x, packed))
    assert out.shape == (N,), out.shape

    ref = jax.block_until_ready(pafnucy_reference(x, params))
    assert jnp.allclose(out, ref, rtol=1e-3, atol=1e-3), (out, ref)

    print("KERNEL_OK")
</pallas_src>

<mosaic_0001>
module attributes {stable_mosaic.version = 11 : i64} {
  func.func @kernel(%arg0: i32, %arg1: memref<1x104x40xf32, #tpu.memory_space<vmem>>, %arg2: memref<9x40x128xf32, #tpu.memory_space<vmem>>, %arg3: memref<1x128xf32, #tpu.memory_space<vmem>>, %arg4: memref<9x96x128xf32, #tpu.memory_space<vmem>>, %arg5: memref<1x128xf32, #tpu.memory_space<vmem>>, %arg6: memref<256x64xf32, #tpu.memory_space<vmem>>, %arg7: memref<1x64xf32, #tpu.memory_space<vmem>>, %arg8: memref<1x64xf32, #tpu.memory_space<vmem>>, %arg9: memref<1x1xf32, #tpu.memory_space<vmem>>, %arg10: memref<1x1x1xf32, #tpu.memory_space<vmem>>, %arg11: memref<80x128xf32, #tpu.memory_space<vmem>>, %arg12: memref<40x96xf32, #tpu.memory_space<vmem>>, %arg13: memref<24x128xf32, #tpu.memory_space<vmem>>) attributes {dimension_semantics = [#tpu.dimension_semantics<parallel>], iteration_bounds = array<i64: 2>, scalar_prefetch = 0 : i64, scratch_operands = 3 : i64, tpu.core_type = #tpu.core_type<tc>, window_params = [{transform_indices = @transform_0, window_bounds = array<i64: 1, 104, 40>}, {pipeline_mode = #tpu.pipeline_mode<synchronous>, transform_indices = @transform_1, window_bounds = array<i64: 9, 40, 128>}, {pipeline_mode = #tpu.pipeline_mode<synchronous>, transform_indices = @transform_2, window_bounds = array<i64: 1, 128>}, {pipeline_mode = #tpu.pipeline_mode<synchronous>, transform_indices = @transform_3, window_bounds = array<i64: 9, 96, 128>}, {pipeline_mode = #tpu.pipeline_mode<synchronous>, transform_indices = @transform_4, window_bounds = array<i64: 1, 128>}, {pipeline_mode = #tpu.pipeline_mode<synchronous>, transform_indices = @transform_5, window_bounds = array<i64: 256, 64>}, {pipeline_mode = #tpu.pipeline_mode<synchronous>, transform_indices = @transform_6, window_bounds = array<i64: 1, 64>}, {pipeline_mode = #tpu.pipeline_mode<synchronous>, transform_indices = @transform_7, window_bounds = array<i64: 1, 64>}, {pipeline_mode = #tpu.pipeline_mode<synchronous>, transform_indices = @transform_8, window_bounds = array<i64: 1, 1>}, {transform_indices = @transform_9, window_bounds = array<i64: 1, 1, 1>}]} {
    %cst = arith.constant 0.000000e+00 : f32
    %0 = vector.broadcast %cst : f32 to vector<80x128xf32>
    %c0 = arith.constant 0 : index
    %c0_0 = arith.constant 0 : index
    %c0_1 = arith.constant 0 : index
    %1 = vector.load %arg1[%c0, %c0_0, %c0_1] : memref<1x104x40xf32, #tpu.memory_space<vmem>>, vector<1x80x40xf32>
    %2 = vector.shape_cast %1 : vector<1x80x40xf32> to vector<80x40xf32>
    %c0_2 = arith.constant 0 : index
    %c0_3 = arith.constant 0 : index
    %c0_4 = arith.constant 0 : index
    %3 = vector.load %arg2[%c0_2, %c0_3, %c0_4] : memref<9x40x128xf32, #tpu.memory_space<vmem>>, vector<1x40x128xf32>
    %4 = vector.shape_cast %3 : vector<1x40x128xf32> to vector<40x128xf32>
    %cst_5 = arith.constant dense<0.000000e+00> : vector<80x128xf32>
    %5 = tpu.matmul %2, %4, %cst_5 {dimension_numbers = #tpu.dot_dimension_numbers<[1], [0], [0], [1], [0, 0, 1, 1], [], []>} : vector<80x40xf32>, vector<40x128xf32>, vector<80x128xf32> -> vector<80x128xf32>
    %6 = arith.addf %0, %5 : vector<80x128xf32>
    %c0_6 = arith.constant 0 : index
    %c1 = arith.constant 1 : index
    %c0_7 = arith.constant 0 : index
    %7 = vector.load %arg1[%c0_6, %c1, %c0_7] : memref<1x104x40xf32, #tpu.memory_space<vmem>>, vector<1x80x40xf32>
    %8 = vector.shape_cast %7 : vector<1x80x40xf32> to vector<80x40xf32>
    %c1_8 = arith.constant 1 : index
    %c0_9 = arith.constant 0 : index
    %c0_10 = arith.constant 0 : index
    %9 = vector.load %arg2[%c1_8, %c0_9, %c0_10] : memref<9x40x128xf32, #tpu.memory_space<vmem>>, vector<1x40x128xf32>
    %10 = vector.shape_cast %9 : vector<1x40x128xf32> to vector<40x128xf32>
    %cst_11 = arith.constant dense<0.000000e+00> : vector<80x128xf32>
    %11 = tpu.matmul %8, %10, %cst_11 {dimension_numbers = #tpu.dot_dimension_numbers<[1], [0], [0], [1], [0, 0, 1, 1], [], []>} : vector<80x40xf32>, vector<40x128xf32>, vector<80x128xf32> -> vector<80x128xf32>
    %12 = arith.addf %6, %11 : vector<80x128xf32>
    %c0_12 = arith.constant 0 : index
    %c2 = arith.constant 2 : index
    %c0_13 = arith.constant 0 : index
    %13 = vector.load %arg1[%c0_12, %c2, %c0_13] : memref<1x104x40xf32, #tpu.memory_space<vmem>>, vector<1x80x40xf32>
    %14 = vector.shape_cast %13 : vector<1x80x40xf32> to vector<80x40xf32>
    %c2_14 = arith.constant 2 : index
    %c0_15 = arith.constant 0 : index
    %c0_16 = arith.constant 0 : index
    %15 = vector.load %arg2[%c2_14, %c0_15, %c0_16] : memref<9x40x128xf32, #tpu.memory_space<vmem>>, vector<1x40x128xf32>
    %16 = vector.shape_cast %15 : vector<1x40x128xf32> to vector<40x128xf32>
    %cst_17 = arith.constant dense<0.000000e+00> : vector<80x128xf32>
    %17 = tpu.matmul %14, %16, %cst_17 {dimension_numbers = #tpu.dot_dimension_numbers<[1], [0], [0], [1], [0, 0, 1, 1], [], []>} : vector<80x40xf32>, vector<40x128xf32>, vector<80x128xf32> -> vector<80x128xf32>
    %18 = arith.addf %12, %17 : vector<80x128xf32>
    %c0_18 = arith.constant 0 : index
    %c10 = arith.constant 10 : index
    %c0_19 = arith.constant 0 : index
    %19 = vector.load %arg1[%c0_18, %c10, %c0_19] : memref<1x104x40xf32, #tpu.memory_space<vmem>>, vector<1x80x40xf32>
    %20 = vector.shape_cast %19 : vector<1x80x40xf32> to vector<80x40xf32>
    %c3 = arith.constant 3 : index
    %c0_20 = arith.constant 0 : index
    %c0_21 = arith.constant 0 : index
    %21 = vector.load %arg2[%c3, %c0_20, %c0_21] : memref<9x40x128xf32, #tpu.memory_space<vmem>>, vector<1x40x128xf32>
    %22 = vector.shape_cast %21 : vector<1x40x128xf32> to vector<40x128xf32>
    %cst_22 = arith.constant dense<0.000000e+00> : vector<80x128xf32>
    %23 = tpu.matmul %20, %22, %cst_22 {dimension_numbers = #tpu.dot_dimension_numbers<[1], [0], [0], [1], [0, 0, 1, 1], [], []>} : vector<80x40xf32>, vector<40x128xf32>, vector<80x128xf32> -> vector<80x128xf32>
    %24 = arith.addf %18, %23 : vector<80x128xf32>
    %c0_23 = arith.constant 0 : index
    %c11 = arith.constant 11 : index
    %c0_24 = arith.constant 0 : index
    %25 = vector.load %arg1[%c0_23, %c11, %c0_24] : memref<1x104x40xf32, #tpu.memory_space<vmem>>, vector<1x80x40xf32>
    %26 = vector.shape_cast %25 : vector<1x80x40xf32> to vector<80x40xf32>
    %c4 = arith.constant 4 : index
    %c0_25 = arith.constant 0 : index
    %c0_26 = arith.constant 0 : index
    %27 = vector.load %arg2[%c4, %c0_25, %c0_26] : memref<9x40x128xf32, #tpu.memory_space<vmem>>, vector<1x40x128xf32>
    %28 = vector.shape_cast %27 : vector<1x40x128xf32> to vector<40x128xf32>
    %cst_27 = arith.constant dense<0.000000e+00> : vector<80x128xf32>
    %29 = tpu.matmul %26, %28, %cst_27 {dimension_numbers = #tpu.dot_dimension_numbers<[1], [0], [0], [1], [0, 0, 1, 1], [], []>} : vector<80x40xf32>, vector<40x128xf32>, vector<80x128xf32> -> vector<80x128xf32>
    %30 = arith.addf %24, %29 : vector<80x128xf32>
    %c0_28 = arith.constant 0 : index
    %c12 = arith.constant 12 : index
    %c0_29 = arith.constant 0 : index
    %31 = vector.load %arg1[%c0_28, %c12, %c0_29] : memref<1x104x40xf32, #tpu.memory_space<vmem>>, vector<1x80x40xf32>
    %32 = vector.shape_cast %31 : vector<1x80x40xf32> to vector<80x40xf32>
    %c5 = arith.constant 5 : index
    %c0_30 = arith.constant 0 : index
    %c0_31 = arith.constant 0 : index
    %33 = vector.load %arg2[%c5, %c0_30, %c0_31] : memref<9x40x128xf32, #tpu.memory_space<vmem>>, vector<1x40x128xf32>
    %34 = vector.shape_cast %33 : vector<1x40x128xf32> to vector<40x128xf32>
    %cst_32 = arith.constant dense<0.000000e+00> : vector<80x128xf32>
    %35 = tpu.matmul %32, %34, %cst_32 {dimension_numbers = #tpu.dot_dimension_numbers<[1], [0], [0], [1], [0, 0, 1, 1], [], []>} : vector<80x40xf32>, vector<40x128xf32>, vector<80x128xf32> -> vector<80x128xf32>
    %36 = arith.addf %30, %35 : vector<80x128xf32>
    %c0_33 = arith.constant 0 : index
    %c20 = arith.constant 20 : index
    %c0_34 = arith.constant 0 : index
    %37 = vector.load %arg1[%c0_33, %c20, %c0_34] : memref<1x104x40xf32, #tpu.memory_space<vmem>>, vector<1x80x40xf32>
    %38 = vector.shape_cast %37 : vector<1x80x40xf32> to vector<80x40xf32>
    %c6 = arith.constant 6 : index
    %c0_35 = arith.constant 0 : index
    %c0_36 = arith.constant 0 : index
    %39 = vector.load %arg2[%c6, %c0_35, %c0_36] : memref<9x40x128xf32, #tpu.memory_space<vmem>>, vector<1x40x128xf32>
    %40 = vector.shape_cast %39 : vector<1x40x128xf32> to vector<40x128xf32>
    %cst_37 = arith.constant dense<0.000000e+00> : vector<80x128xf32>
    %41 = tpu.matmul %38, %40, %cst_37 {dimension_numbers = #tpu.dot_dimension_numbers<[1], [0], [0], [1], [0, 0, 1, 1], [], []>} : vector<80x40xf32>, vector<40x128xf32>, vector<80x128xf32> -> vector<80x128xf32>
    %42 = arith.addf %36, %41 : vector<80x128xf32>
    %c0_38 = arith.constant 0 : index
    %c21 = arith.constant 21 : index
    %c0_39 = arith.constant 0 : index
    %43 = vector.load %arg1[%c0_38, %c21, %c0_39] : memref<1x104x40xf32, #tpu.memory_space<vmem>>, vector<1x80x40xf32>
    %44 = vector.shape_cast %43 : vector<1x80x40xf32> to vector<80x40xf32>
    %c7 = arith.constant 7 : index
    %c0_40 = arith.constant 0 : index
    %c0_41 = arith.constant 0 : index
    %45 = vector.load %arg2[%c7, %c0_40, %c0_41] : memref<9x40x128xf32, #tpu.memory_space<vmem>>, vector<1x40x128xf32>
    %46 = vector.shape_cast %45 : vector<1x40x128xf32> to vector<40x128xf32>
    %cst_42 = arith.constant dense<0.000000e+00> : vector<80x128xf32>
    %47 = tpu.matmul %44, %46, %cst_42 {dimension_numbers = #tpu.dot_dimension_numbers<[1], [0], [0], [1], [0, 0, 1, 1], [], []>} : vector<80x40xf32>, vector<40x128xf32>, vector<80x128xf32> -> vector<80x128xf32>
    %48 = arith.addf %42, %47 : vector<80x128xf32>
    %c0_43 = arith.constant 0 : index
    %c22 = arith.constant 22 : index
    %c0_44 = arith.constant 0 : index
    %49 = vector.load %arg1[%c0_43, %c22, %c0_44] : memref<1x104x40xf32, #tpu.memory_space<vmem>>, vector<1x80x40xf32>
    %50 = vector.shape_cast %49 : vector<1x80x40xf32> to vector<80x40xf32>
    %c8 = arith.constant 8 : index
    %c0_45 = arith.constant 0 : index
    %c0_46 = arith.constant 0 : index
    %51 = vector.load %arg2[%c8, %c0_45, %c0_46] : memref<9x40x128xf32, #tpu.memory_space<vmem>>, vector<1x40x128xf32>
    %52 = vector.shape_cast %51 : vector<1x40x128xf32> to vector<40x128xf32>
    %cst_47 = arith.constant dense<0.000000e+00> : vector<80x128xf32>
    %53 = tpu.matmul %50, %52, %cst_47 {dimension_numbers = #tpu.dot_dimension_numbers<[1], [0], [0], [1], [0, 0, 1, 1], [], []>} : vector<80x40xf32>, vector<40x128xf32>, vector<80x128xf32> -> vector<80x128xf32>
    %54 = arith.addf %48, %53 : vector<80x128xf32>
    %c0_48 = arith.constant 0 : index
    %c0_49 = arith.constant 0 : index
    %55 = vector.load %arg3[%c0_48, %c0_49] : memref<1x128xf32, #tpu.memory_space<vmem>>, vector<1x128xf32>
    %56 = vector.broadcast %55 : vector<1x128xf32> to vector<80x128xf32>
    %57 = arith.addf %54, %56 : vector<80x128xf32>
    %cst_50 = arith.constant 0.000000e+00 : f32
    %58 = vector.broadcast %cst_50 : f32 to vector<80x128xf32>
    %59 = arith.maximumf %57, %58 : vector<80x128xf32>
    %c0_51 = arith.constant 0 : index
    %c0_52 = arith.constant 0 : index
    %60 = vector.load %arg11[%c0_51, %c0_52] : memref<80x128xf32, #tpu.memory_space<vmem>>, vector<80x128xf32>
    tpu.vector_store %arg11[%c0_51, %c0_52], %59 {strides = array<i32>} : memref<80x128xf32, #tpu.memory_space<vmem>>, vector<80x128xf32>,
    %cst_53 = arith.constant 0.000000e+00 : f32
    %61 = vector.broadcast %cst_53 : f32 to vector<40x96xf32>
    %c0_54 = arith.constant 0 : index
    %c0_55 = arith.constant 0 : index
    %62 = vector.load %arg12[%c0_54, %c0_55] : memref<40x96xf32, #tpu.memory_space<vmem>>, vector<40x96xf32>
    tpu.vector_store %arg12[%c0_54, %c0_55], %61 {strides = array<i32>} : memref<40x96xf32, #tpu.memory_space<vmem>>, vector<40x96xf32>,
    %cst_56 = arith.constant 0.000000e+00 : f32
    %63 = vector.broadcast %cst_56 : f32 to vector<4x16xf32>
    %c0_57 = arith.constant 0 : index
    %c0_58 = arith.constant 0 : index
    %64 = tpu.strided_load %arg11[%c0_57, %c0_58] {strides = array<i32: 2, 1>} : memref<80x128xf32, #tpu.memory_space<vmem>>, vector<4x128xf32>
    %c1_59 = arith.constant 1 : index
    %c0_60 = arith.constant 0 : index
    %65 = tpu.strided_load %arg11[%c1_59, %c0_60] {strides = array<i32: 2, 1>} : memref<80x128xf32, #tpu.memory_space<vmem>>, vector<4x128xf32>
    %c10_61 = arith.constant 10 : index
    %c0_62 = arith.constant 0 : index
    %66 = tpu.strided_load %arg11[%c10_61, %c0_62] {strides = array<i32: 2, 1>} : memref<80x128xf32, #tpu.memory_space<vmem>>, vector<4x128xf32>
    %c11_63 = arith.constant 11 : index
    %c0_64 = arith.constant 0 : index
    %67 = tpu.strided_load %arg11[%c11_63, %c0_64] {strides = array<i32: 2, 1>} : memref<80x128xf32, #tpu.memory_space<vmem>>, vector<4x128xf32>
    %68 = arith.maximumf %64, %65 : vector<4x128xf32>
    %69 = arith.maximumf %66, %67 : vector<4x128xf32>
    %70 = arith.maximumf %68, %69 : vector<4x128xf32>
    %71 = vector.extract_strided_slice %70 {offsets = [0, 0], sizes = [4, 16], strides = [1, 1]} : vector<4x128xf32> to vector<4x16xf32>
    %72 = vector.extract_strided_slice %70 {offsets = [0, 16], sizes = [4, 16], strides = [1, 1]} : vector<4x128xf32> to vector<4x16xf32>
    %73 = arith.maximumf %71, %72 : vector<4x16xf32>
    %74 = vector.extract_strided_slice %70 {offsets = [0, 32], sizes = [4, 16], strides = [1, 1]} : vector<4x128xf32> to vector<4x16xf32>
    %75 = vector.extract_strided_slice %70 {offsets = [0, 48], sizes = [4, 16], strides = [1, 1]} : vector<4x128xf32> to vector<4x16xf32>
    %76 = arith.maximumf %74, %75 : vector<4x16xf32>
    %77 = vector.extract_strided_slice %70 {offsets = [0, 64], sizes = [4, 16], strides = [1, 1]} : vector<4x128xf32> to vector<4x16xf32>
    %78 = vector.extract_strided_slice %70 {offsets = [0, 80], sizes = [4, 16], strides = [1, 1]} : vector<4x128xf32> to vector<4x16xf32>
    %79 = arith.maximumf %77, %78 : vector<4x16xf32>
    %80 = vector.extract_strided_slice %70 {offsets = [0, 96], sizes = [4, 16], strides = [1, 1]} : vector<4x128xf32> to vector<4x16xf32>
    %81 = vector.extract_strided_slice %70 {offsets = [0, 112], sizes = [4, 16], strides = [1, 1]} : vector<4x128xf32> to vector<4x16xf32>
    %82 = arith.maximumf %80, %81 : vector<4x16xf32>
    %83 = tpu.concatenate %63, %73, %76, %79, %82, %63 in 1 : vector<4x16xf32>, vector<4x16xf32>, vector<4x16xf32>, vector<4x16xf32>, vector<4x16xf32>, vector<4x16xf32> -> vector<4x96xf32>
    %c7_65 = arith.constant 7 : index
    %c0_66 = arith.constant 0 : index
    %84 = vector.load %arg12[%c7_65, %c0_66] : memref<40x96xf32, #tpu.memory_space<vmem>>, vector<4x96xf32>
    tpu.vector_store %arg12[%c7_65, %c0_66], %83 {strides = array<i32>} : memref<40x96xf32, #tpu.memory_space<vmem>>, vector<4x96xf32>,
    %c20_67 = arith.constant 20 : index
    %c0_68 = arith.constant 0 : index
    %85 = tpu.strided_load %arg11[%c20_67, %c0_68] {strides = array<i32: 2, 1>} : memref<80x128xf32, #tpu.memory_space<vmem>>, vector<4x128xf32>
    %c21_69 = arith.constant 21 : index
    %c0_70 = arith.constant 0 : index
    %86 = tpu.strided_load %arg11[%c21_69, %c0_70] {strides = array<i32: 2, 1>} : memref<80x128xf32, #tpu.memory_space<vmem>>, vector<4x128xf32>
    %c30 = arith.constant 30 : index
    %c0_71 = arith.constant 0 : index
    %87 = tpu.strided_load %arg11[%c30, %c0_71] {strides = array<i32: 2, 1>} : memref<80x128xf32, #tpu.memory_space<vmem>>, vector<4x128xf32>
    %c31 = arith.constant 31 : index
    %c0_72 = arith.constant 0 : index
    %88 = tpu.strided_load %arg11[%c31, %c0_72] {strides = array<i32: 2, 1>} : memref<80x128xf32, #tpu.memory_space<vmem>>, vector<4x128xf32>
    %89 = arith.maximumf %85, %86 : vector<4x128xf32>
    %90 = arith.maximumf %87, %88 : vector<4x128xf32>
    %91 = arith.maximumf %89, %90 : vector<4x128xf32>
    %92 = vector.extract_strided_slice %91 {offsets = [0, 0], sizes = [4, 16], strides = [1, 1]} : vector<4x128xf32> to vector<4x16xf32>
    %93 = vector.extract_strided_slice %91 {offsets = [0, 16], sizes = [4, 16], strides = [1, 1]} : vector<4x128xf32> to vector<4x16xf32>
    %94 = arith.maximumf %92, %93 : vector<4x16xf32>
    %95 = vector.extract_strided_slice %91 {offsets = [0, 32], sizes = [4, 16], strides = [1, 1]} : vector<4x128xf32> to vector<4x16xf32>
    %96 = vector.extract_strided_slice %91 {offsets = [0, 48], sizes = [4, 16], strides = [1, 1]} : vector<4x128xf32> to vector<4x16xf32>
    %97 = arith.maximumf %95, %96 : vector<4x16xf32>
    %98 = vector.extract_strided_slice %91 {offsets = [0, 64], sizes = [4, 16], strides = [1, 1]} : vector<4x128xf32> to vector<4x16xf32>
    %99 = vector.extract_strided_slice %91 {offsets = [0, 80], sizes = [4, 16], strides = [1, 1]} : vector<4x128xf32> to vector<4x16xf32>
    %100 = arith.maximumf %98, %99 : vector<4x16xf32>
    %101 = vector.extract_strided_slice %91 {offsets = [0, 96], sizes = [4, 16], strides = [1, 1]} : vector<4x128xf32> to vector<4x16xf32>
    %102 = vector.extract_strided_slice %91 {offsets = [0, 112], sizes = [4, 16], strides = [1, 1]} : vector<4x128xf32> to vector<4x16xf32>
    %103 = arith.maximumf %101, %102 : vector<4x16xf32>
    %104 = tpu.concatenate %63, %94, %97, %100, %103, %63 in 1 : vector<4x16xf32>, vector<4x16xf32>, vector<4x16xf32>, vector<4x16xf32>, vector<4x16xf32>, vector<4x16xf32> -> vector<4x96xf32>
    %c13 = arith.constant 13 : index
    %c0_73 = arith.constant 0 : index
    %105 = vector.load %arg12[%c13, %c0_73] : memref<40x96xf32, #tpu.memory_space<vmem>>, vector<4x96xf32>
    tpu.vector_store %arg12[%c13, %c0_73], %104 {strides = array<i32>} : memref<40x96xf32, #tpu.memory_space<vmem>>, vector<4x96xf32>,
    %c40 = arith.constant 40 : index
    %c0_74 = arith.constant 0 : index
    %106 = tpu.strided_load %arg11[%c40, %c0_74] {strides = array<i32: 2, 1>} : memref<80x128xf32, #tpu.memory_space<vmem>>, vector<4x128xf32>
    %c41 = arith.constant 41 : index
    %c0_75 = arith.constant 0 : index
    %107 = tpu.strided_load %arg11[%c41, %c0_75] {strides = array<i32: 2, 1>} : memref<80x128xf32, #tpu.memory_space<vmem>>, vector<4x128xf32>
    %c50 = arith.constant 50 : index
    %c0_76 = arith.constant 0 : index
    %108 = tpu.strided_load %arg11[%c50, %c0_76] {strides = array<i32: 2, 1>} : memref<80x128xf32, #tpu.memory_space<vmem>>, vector<4x128xf32>
    %c51 = arith.constant 51 : index
    %c0_77 = arith.constant 0 : index
    %109 = tpu.strided_load %arg11[%c51, %c0_77] {strides = array<i32: 2, 1>} : memref<80x128xf32, #tpu.memory_space<vmem>>, vector<4x128xf32>
    %110 = arith.maximumf %106, %107 : vector<4x128xf32>
    %111 = arith.maximumf %108, %109 : vector<4x128xf32>
    %112 = arith.maximumf %110, %111 : vector<4x128xf32>
    %113 = vector.extract_strided_slice %112 {offsets = [0, 0], sizes = [4, 16], strides = [1, 1]} : vector<4x128xf32> to vector<4x16xf32>
    %114 = vector.extract_strided_slice %112 {offsets = [0, 16], sizes = [4, 16], strides = [1, 1]} : vector<4x128xf32> to vector<4x16xf32>
    %115 = arith.maximumf %113, %114 : vector<4x16xf32>
    %116 = vector.extract_strided_slice %112 {offsets = [0, 32], sizes = [4, 16], strides = [1, 1]} : vector<4x128xf32> to vector<4x16xf32>
    %117 = vector.extract_strided_slice %112 {offsets = [0, 48], sizes = [4, 16], strides = [1, 1]} : vector<4x128xf32> to vector<4x16xf32>
    %118 = arith.maximumf %116, %117 : vector<4x16xf32>
    %119 = vector.extract_strided_slice %112 {offsets = [0, 64], sizes = [4, 16], strides = [1, 1]} : vector<4x128xf32> to vector<4x16xf32>
    %120 = vector.extract_strided_slice %112 {offsets = [0, 80], sizes = [4, 16], strides = [1, 1]} : vector<4x128xf32> to vector<4x16xf32>
    %121 = arith.maximumf %119, %120 : vector<4x16xf32>
    %122 = vector.extract_strided_slice %112 {offsets = [0, 96], sizes = [4, 16], strides = [1, 1]} : vector<4x128xf32> to vector<4x16xf32>
    %123 = vector.extract_strided_slice %112 {offsets = [0, 112], sizes = [4, 16], strides = [1, 1]} : vector<4x128xf32> to vector<4x16xf32>
    %124 = arith.maximumf %122, %123 : vector<4x16xf32>
    %125 = tpu.concatenate %63, %115, %118, %121, %124, %63 in 1 : vector<4x16xf32>, vector<4x16xf32>, vector<4x16xf32>, vector<4x16xf32>, vector<4x16xf32>, vector<4x16xf32> -> vector<4x96xf32>
    %c19 = arith.constant 19 : index
    %c0_78 = arith.constant 0 : index
    %126 = vector.load %arg12[%c19, %c0_78] : memref<40x96xf32, #tpu.memory_space<vmem>>, vector<4x96xf32>
    tpu.vector_store %arg12[%c19, %c0_78], %125 {strides = array<i32>} : memref<40x96xf32, #tpu.memory_space<vmem>>, vector<4x96xf32>,
    %c60 = arith.constant 60 : index
    %c0_79 = arith.constant 0 : index
    %127 = tpu.strided_load %arg11[%c60, %c0_79] {strides = array<i32: 2, 1>} : memref<80x128xf32, #tpu.memory_space<vmem>>, vector<4x128xf32>
    %c61 = arith.constant 61 : index
    %c0_80 = arith.constant 0 : index
    %128 = tpu.strided_load %arg11[%c61, %c0_80] {strides = array<i32: 2, 1>} : memref<80x128xf32, #tpu.memory_space<vmem>>, vector<4x128xf32>
    %c70 = arith.constant 70 : index
    %c0_81 = arith.constant 0 : index
    %129 = tpu.strided_load %arg11[%c70, %c0_81] {strides = array<i32: 2, 1>} : memref<80x128xf32, #tpu.memory_space<vmem>>, vector<4x128xf32>
    %c71 = arith.constant 71 : index
    %c0_82 = arith.constant 0 : index
    %130 = tpu.strided_load %arg11[%c71, %c0_82] {strides = array<i32: 2, 1>} : memref<80x128xf32, #tpu.memory_space<vmem>>, vector<4x128xf32>
    %131 = arith.maximumf %127, %128 : vector<4x128xf32>
    %132 = arith.maximumf %129, %130 : vector<4x128xf32>
    %133 = arith.maximumf %131, %132 : vector<4x128xf32>
    %134 = vector.extract_strided_slice %133 {offsets = [0, 0], sizes = [4, 16], strides = [1, 1]} : vector<4x128xf32> to vector<4x16xf32>
    %135 = vector.extract_strided_slice %133 {offsets = [0, 16], sizes = [4, 16], strides = [1, 1]} : vector<4x128xf32> to vector<4x16xf32>
    %136 = arith.maximumf %134, %135 : vector<4x16xf32>
    %137 = vector.extract_strided_slice %133 {offsets = [0, 32], sizes = [4, 16], strides = [1, 1]} : vector<4x128xf32> to vector<4x16xf32>
    %138 = vector.extract_strided_slice %133 {offsets = [0, 48], sizes = [4, 16], strides = [1, 1]} : vector<4x128xf32> to vector<4x16xf32>
    %139 = arith.maximumf %137, %138 : vector<4x16xf32>
    %140 = vector.extract_strided_slice %133 {offsets = [0, 64], sizes = [4, 16], strides = [1, 1]} : vector<4x128xf32> to vector<4x16xf32>
    %141 = vector.extract_strided_slice %133 {offsets = [0, 80], sizes = [4, 16], strides = [1, 1]} : vector<4x128xf32> to vector<4x16xf32>
    %142 = arith.maximumf %140, %141 : vector<4x16xf32>
    %143 = vector.extract_strided_slice %133 {offsets = [0, 96], sizes = [4, 16], strides = [1, 1]} : vector<4x128xf32> to vector<4x16xf32>
    %144 = vector.extract_strided_slice %133 {offsets = [0, 112], sizes = [4, 16], strides = [1, 1]} : vector<4x128xf32> to vector<4x16xf32>
    %145 = arith.maximumf %143, %144 : vector<4x16xf32>
    %146 = tpu.concatenate %63, %136, %139, %142, %145, %63 in 1 : vector<4x16xf32>, vector<4x16xf32>, vector<4x16xf32>, vector<4x16xf32>, vector<4x16xf32>, vector<4x16xf32> -> vector<4x96xf32>
    %c25 = arith.constant 25 : index
    %c0_83 = arith.constant 0 : index
    %147 = vector.load %arg12[%c25, %c0_83] : memref<40x96xf32, #tpu.memory_space<vmem>>, vector<4x96xf32>
    tpu.vector_store %arg12[%c25, %c0_83], %146 {strides = array<i32>} : memref<40x96xf32, #tpu.memory_space<vmem>>, vector<4x96xf32>,
    %cst_84 = arith.constant 0.000000e+00 : f32
    %148 = vector.broadcast %cst_84 : f32 to vector<24x128xf32>
    %c0_85 = arith.constant 0 : index
    %c0_86 = arith.constant 0 : index
    %149 = vector.load %arg12[%c0_85, %c0_86] : memref<40x96xf32, #tpu.memory_space<vmem>>, vector<24x96xf32>
    %c0_87 = arith.constant 0 : index
    %c0_88 = arith.constant 0 : index
    %c0_89 = arith.constant 0 : index
    %150 = vector.load %arg4[%c0_87, %c0_88, %c0_89] : memref<9x96x128xf32, #tpu.memory_space<vmem>>, vector<1x96x128xf32>
    %151 = vector.shape_cast %150 : vector<1x96x128xf32> to vector<96x128xf32>
    %cst_90 = arith.constant dense<0.000000e+00> : vector<24x128xf32>
    %152 = tpu.matmul %149, %151, %cst_90 {dimension_numbers = #tpu.dot_dimension_numbers<[1], [0], [0], [1], [0, 0, 1, 1], [], []>} : vector<24x96xf32>, vector<96x128xf32>, vector<24x128xf32> -> vector<24x128xf32>
    %153 = arith.addf %148, %152 : vector<24x128xf32>
    %c1_91 = arith.constant 1 : index
    %c0_92 = arith.constant 0 : index
    %154 = vector.load %arg12[%c1_91, %c0_92] : memref<40x96xf32, #tpu.memory_space<vmem>>, vector<24x96xf32>
    %c1_93 = arith.constant 1 : index
    %c0_94 = arith.constant 0 : index
    %c0_95 = arith.constant 0 : index
    %155 = vector.load %arg4[%c1_93, %c0_94, %c0_95] : memref<9x96x128xf32, #tpu.memory_space<vmem>>, vector<1x96x128xf32>
    %156 = vector.shape_cast %155 : vector<1x96x128xf32> to vector<96x128xf32>
    %cst_96 = arith.constant dense<0.000000e+00> : vector<24x128xf32>
    %157 = tpu.matmul %154, %156, %cst_96 {dimension_numbers = #tpu.dot_dimension_numbers<[1], [0], [0], [1], [0, 0, 1, 1], [], []>} : vector<24x96xf32>, vector<96x128xf32>, vector<24x128xf32> -> vector<24x128xf32>
    %158 = arith.addf %153, %157 : vector<24x128xf32>
    %c2_97 = arith.constant 2 : index
    %c0_98 = arith.constant 0 : index
    %159 = vector.load %arg12[%c2_97, %c0_98] : memref<40x96xf32, #tpu.memory_space<vmem>>, vector<24x96xf32>
    %c2_99 = arith.constant 2 : index
    %c0_100 = arith.constant 0 : index
    %c0_101 = arith.constant 0 : index
    %160 = vector.load %arg4[%c2_99, %c0_100, %c0_101] : memref<9x96x128xf32, #tpu.memory_space<vmem>>, vector<1x96x128xf32>
    %161 = vector.shape_cast %160 : vector<1x96x128xf32> to vector<96x128xf32>
    %cst_102 = arith.constant dense<0.000000e+00> : vector<24x128xf32>
    %162 = tpu.matmul %159, %161, %cst_102 {dimension_numbers = #tpu.dot_dimension_numbers<[1], [0], [0], [1], [0, 0, 1, 1], [], []>} : vector<24x96xf32>, vector<96x128xf32>, vector<24x128xf32> -> vector<24x128xf32>
    %163 = arith.addf %158, %162 : vector<24x128xf32>
    %c6_103 = arith.constant 6 : index
    %c0_104 = arith.constant 0 : index
    %164 = vector.load %arg12[%c6_103, %c0_104] : memref<40x96xf32, #tpu.memory_space<vmem>>, vector<24x96xf32>
    %c3_105 = arith.constant 3 : index
    %c0_106 = arith.constant 0 : index
    %c0_107 = arith.constant 0 : index
    %165 = vector.load %arg4[%c3_105, %c0_106, %c0_107] : memref<9x96x128xf32, #tpu.memory_space<vmem>>, vector<1x96x128xf32>
    %166 = vector.shape_cast %165 : vector<1x96x128xf32> to vector<96x128xf32>
    %cst_108 = arith.constant dense<0.000000e+00> : vector<24x128xf32>
    %167 = tpu.matmul %164, %166, %cst_108 {dimension_numbers = #tpu.dot_dimension_numbers<[1], [0], [0], [1], [0, 0, 1, 1], [], []>} : vector<24x96xf32>, vector<96x128xf32>, vector<24x128xf32> -> vector<24x128xf32>
    %168 = arith.addf %163, %167 : vector<24x128xf32>
    %c7_109 = arith.constant 7 : index
    %c0_110 = arith.constant 0 : index
    %169 = vector.load %arg12[%c7_109, %c0_110] : memref<40x96xf32, #tpu.memory_space<vmem>>, vector<24x96xf32>
    %c4_111 = arith.constant 4 : index
    %c0_112 = arith.constant 0 : index
    %c0_113 = arith.constant 0 : index
    %170 = vector.load %arg4[%c4_111, %c0_112, %c0_113] : memref<9x96x128xf32, #tpu.memory_space<vmem>>, vector<1x96x128xf32>
    %171 = vector.shape_cast %170 : vector<1x96x128xf32> to vector<96x128xf32>
    %cst_114 = arith.constant dense<0.000000e+00> : vector<24x128xf32>
    %172 = tpu.matmul %169, %171, %cst_114 {dimension_numbers = #tpu.dot_dimension_numbers<[1], [0], [0], [1], [0, 0, 1, 1], [], []>} : vector<24x96xf32>, vector<96x128xf32>, vector<24x128xf32> -> vector<24x128xf32>
    %173 = arith.addf %168, %172 : vector<24x128xf32>
    %c8_115 = arith.constant 8 : index
    %c0_116 = arith.constant 0 : index
    %174 = vector.load %arg12[%c8_115, %c0_116] : memref<40x96xf32, #tpu.memory_space<vmem>>, vector<24x96xf32>
    %c5_117 = arith.constant 5 : index
    %c0_118 = arith.constant 0 : index
    %c0_119 = arith.constant 0 : index
    %175 = vector.load %arg4[%c5_117, %c0_118, %c0_119] : memref<9x96x128xf32, #tpu.memory_space<vmem>>, vector<1x96x128xf32>
    %176 = vector.shape_cast %175 : vector<1x96x128xf32> to vector<96x128xf32>
    %cst_120 = arith.constant dense<0.000000e+00> : vector<24x128xf32>
    %177 = tpu.matmul %174, %176, %cst_120 {dimension_numbers = #tpu.dot_dimension_numbers<[1], [0], [0], [1], [0, 0, 1, 1], [], []>} : vector<24x96xf32>, vector<96x128xf32>, vector<24x128xf32> -> vector<24x128xf32>
    %178 = arith.addf %173, %177 : vector<24x128xf32>
    %c12_121 = arith.constant 12 : index
    %c0_122 = arith.constant 0 : index
    %179 = vector.load %arg12[%c12_121, %c0_122] : memref<40x96xf32, #tpu.memory_space<vmem>>, vector<24x96xf32>
    %c6_123 = arith.constant 6 : index
    %c0_124 = arith.constant 0 : index
    %c0_125 = arith.constant 0 : index
    %180 = vector.load %arg4[%c6_123, %c0_124, %c0_125] : memref<9x96x128xf32, #tpu.memory_space<vmem>>, vector<1x96x128xf32>
    %181 = vector.shape_cast %180 : vector<1x96x128xf32> to vector<96x128xf32>
    %cst_126 = arith.constant dense<0.000000e+00> : vector<24x128xf32>
    %182 = tpu.matmul %179, %181, %cst_126 {dimension_numbers = #tpu.dot_dimension_numbers<[1], [0], [0], [1], [0, 0, 1, 1], [], []>} : vector<24x96xf32>, vector<96x128xf32>, vector<24x128xf32> -> vector<24x128xf32>
    %183 = arith.addf %178, %182 : vector<24x128xf32>
    %c13_127 = arith.constant 13 : index
    %c0_128 = arith.constant 0 : index
    %184 = vector.load %arg12[%c13_127, %c0_128] : memref<40x96xf32, #tpu.memory_space<vmem>>, vector<24x96xf32>
    %c7_129 = arith.constant 7 : index
    %c0_130 = arith.constant 0 : index
    %c0_131 = arith.constant 0 : index
    %185 = vector.load %arg4[%c7_129, %c0_130, %c0_131] : memref<9x96x128xf32, #tpu.memory_space<vmem>>, vector<1x96x128xf32>
    %186 = vector.shape_cast %185 : vector<1x96x128xf32> to vector<96x128xf32>
    %cst_132 = arith.constant dense<0.000000e+00> : vector<24x128xf32>
    %187 = tpu.matmul %184, %186, %cst_132 {dimension_numbers = #tpu.dot_dimension_numbers<[1], [0], [0], [1], [0, 0, 1, 1], [], []>} : vector<24x96xf32>, vector<96x128xf32>, vector<24x128xf32> -> vector<24x128xf32>
    %188 = arith.addf %183, %187 : vector<24x128xf32>
    %c14 = arith.constant 14 : index
    %c0_133 = arith.constant 0 : index
    %189 = vector.load %arg12[%c14, %c0_133] : memref<40x96xf32, #tpu.memory_space<vmem>>, vector<24x96xf32>
    %c8_134 = arith.constant 8 : index
    %c0_135 = arith.constant 0 : index
    %c0_136 = arith.constant 0 : index
    %190 = vector.load %arg4[%c8_134, %c0_135, %c0_136] : memref<9x96x128xf32, #tpu.memory_space<vmem>>, vector<1x96x128xf32>
    %191 = vector.shape_cast %190 : vector<1x96x128xf32> to vector<96x128xf32>
    %cst_137 = arith.constant dense<0.000000e+00> : vector<24x128xf32>
    %192 = tpu.matmul %189, %191, %cst_137 {dimension_numbers = #tpu.dot_dimension_numbers<[1], [0], [0], [1], [0, 0, 1, 1], [], []>} : vector<24x96xf32>, vector<96x128xf32>, vector<24x128xf32> -> vector<24x128xf32>
    %193 = arith.addf %188, %192 : vector<24x128xf32>
    %c0_138 = arith.constant 0 : index
    %c0_139 = arith.constant 0 : index
    %194 = vector.load %arg5[%c0_138, %c0_139] : memref<1x128xf32, #tpu.memory_space<vmem>>, vector<1x128xf32>
    %195 = vector.broadcast %194 : vector<1x128xf32> to vector<24x128xf32>
    %196 = arith.addf %193, %195 : vector<24x128xf32>
    %cst_140 = arith.constant 0.000000e+00 : f32
    %197 = vector.broadcast %cst_140 : f32 to vector<24x128xf32>
    %198 = arith.maximumf %196, %197 : vector<24x128xf32>
    %c0_141 = arith.constant 0 : index
    %c0_142 = arith.constant 0 : index
    %199 = vector.load %arg13[%c0_141, %c0_142] : memref<24x128xf32, #tpu.memory_space<vmem>>, vector<24x128xf32>
    tpu.vector_store %arg13[%c0_141, %c0_142], %198 {strides = array<i32>} : memref<24x128xf32, #tpu.memory_space<vmem>>, vector<24x128xf32>,
    %c0_143 = arith.constant 0 : index
    %c0_144 = arith.constant 0 : index
    %200 = tpu.strided_load %arg13[%c0_143, %c0_144] {strides = array<i32: 2, 1>} : memref<24x128xf32, #tpu.memory_space<vmem>>, vector<2x128xf32>
    %c1_145 = arith.constant 1 : index
    %c0_146 = arith.constant 0 : index
    %201 = tpu.strided_load %arg13[%c1_145, %c0_146] {strides = array<i32: 2, 1>} : memref<24x128xf32, #tpu.memory_space<vmem>>, vector<2x128xf32>
    %c6_147 = arith.constant 6 : index
    %c0_148 = arith.constant 0 : index
    %202 = tpu.strided_load %arg13[%c6_147, %c0_148] {strides = array<i32: 2, 1>} : memref<24x128xf32, #tpu.memory_space<vmem>>, vector<2x128xf32>
    %c7_149 = arith.constant 7 : index
    %c0_150 = arith.constant 0 : index
    %203 = tpu.strided_load %arg13[%c7_149, %c0_150] {strides = array<i32: 2, 1>} : memref<24x128xf32, #tpu.memory_space<vmem>>, vector<2x128xf32>
    %204 = arith.maximumf %200, %201 : vector<2x128xf32>
    %205 = arith.maximumf %202, %203 : vector<2x128xf32>
    %206 = arith.maximumf %204, %205 : vector<2x128xf32>
    %207 = vector.extract_strided_slice %206 {offsets = [0, 0], sizes = [1, 32], strides = [1, 1]} : vector<2x128xf32> to vector<1x32xf32>
    %208 = vector.extract_strided_slice %206 {offsets = [0, 32], sizes = [1, 32], strides = [1, 1]} : vector<2x128xf32> to vector<1x32xf32>
    %209 = arith.maximumf %207, %208 : vector<1x32xf32>
    %210 = vector.extract_strided_slice %206 {offsets = [0, 64], sizes = [1, 32], strides = [1, 1]} : vector<2x128xf32> to vector<1x32xf32>
    %211 = vector.extract_strided_slice %206 {offsets = [0, 96], sizes = [1, 32], strides = [1, 1]} : vector<2x128xf32> to vector<1x32xf32>
    %212 = arith.maximumf %210, %211 : vector<1x32xf32>
    %213 = vector.extract_strided_slice %206 {offsets = [1, 0], sizes = [1, 32], strides = [1, 1]} : vector<2x128xf32> to vector<1x32xf32>
    %214 = vector.extract_strided_slice %206 {offsets = [1, 32], sizes = [1, 32], strides = [1, 1]} : vector<2x128xf32> to vector<1x32xf32>
    %215 = arith.maximumf %213, %214 : vector<1x32xf32>
    %216 = vector.extract_strided_slice %206 {offsets = [1, 64], sizes = [1, 32], strides = [1, 1]} : vector<2x128xf32> to vector<1x32xf32>
    %217 = vector.extract_strided_slice %206 {offsets = [1, 96], sizes = [1, 32], strides = [1, 1]} : vector<2x128xf32> to vector<1x32xf32>
    %218 = arith.maximumf %216, %217 : vector<1x32xf32>
    %c12_151 = arith.constant 12 : index
    %c0_152 = arith.constant 0 : index
    %219 = tpu.strided_load %arg13[%c12_151, %c0_152] {strides = array<i32: 2, 1>} : memref<24x128xf32, #tpu.memory_space<vmem>>, vector<2x128xf32>
    %c13_153 = arith.constant 13 : index
    %c0_154 = arith.constant 0 : index
    %220 = tpu.strided_load %arg13[%c13_153, %c0_154] {strides = array<i32: 2, 1>} : memref<24x128xf32, #tpu.memory_space<vmem>>, vector<2x128xf32>
    %c18 = arith.constant 18 : index
    %c0_155 = arith.constant 0 : index
    %221 = tpu.strided_load %arg13[%c18, %c0_155] {strides = array<i32: 2, 1>} : memref<24x128xf32, #tpu.memory_space<vmem>>, vector<2x128xf32>
    %c19_156 = arith.constant 19 : index
    %c0_157 = arith.constant 0 : index
    %222 = tpu.strided_load %arg13[%c19_156, %c0_157] {strides = array<i32: 2, 1>} : memref<24x128xf32, #tpu.memory_space<vmem>>, vector<2x128xf32>
    %223 = arith.maximumf %219, %220 : vector<2x128xf32>
    %224 = arith.maximumf %221, %222 : vector<2x128xf32>
    %225 = arith.maximumf %223, %224 : vector<2x128xf32>
    %226 = vector.extract_strided_slice %225 {offsets = [0, 0], sizes = [1, 32], strides = [1, 1]} : vector<2x128xf32> to vector<1x32xf32>
    %227 = vector.extract_strided_slice %225 {offsets = [0, 32], sizes = [1, 32], strides = [1, 1]} : vector<2x128xf32> to vector<1x32xf32>
    %228 = arith.maximumf %226, %227 : vector<1x32xf32>
    %229 = vector.extract_strided_slice %225 {offsets = [0, 64], sizes = [1, 32], strides = [1, 1]} : vector<2x128xf32> to vector<1x32xf32>
    %230 = vector.extract_strided_slice %225 {offsets = [0, 96], sizes = [1, 32], strides = [1, 1]} : vector<2x128xf32> to vector<1x32xf32>
    %231 = arith.maximumf %229, %230 : vector<1x32xf32>
    %232 = vector.extract_strided_slice %225 {offsets = [1, 0], sizes = [1, 32], strides = [1, 1]} : vector<2x128xf32> to vector<1x32xf32>
    %233 = vector.extract_strided_slice %225 {offsets = [1, 32], sizes = [1, 32], strides = [1, 1]} : vector<2x128xf32> to vector<1x32xf32>
    %234 = arith.maximumf %232, %233 : vector<1x32xf32>
    %235 = vector.extract_strided_slice %225 {offsets = [1, 64], sizes = [1, 32], strides = [1, 1]} : vector<2x128xf32> to vector<1x32xf32>
    %236 = vector.extract_strided_slice %225 {offsets = [1, 96], sizes = [1, 32], strides = [1, 1]} : vector<2x128xf32> to vector<1x32xf32>
    %237 = arith.maximumf %235, %236 : vector<1x32xf32>
    %238 = tpu.concatenate %209, %212, %215, %218, %228, %231, %234, %237 in 1 : vector<1x32xf32>, vector<1x32xf32>, vector<1x32xf32>, vector<1x32xf32>, vector<1x32xf32>, vector<1x32xf32>, vector<1x32xf32>, vector<1x32xf32> -> vector<1x256xf32>
    %cst_158 = arith.constant 0.000000e+00 : f32
    %239 = vector.broadcast %cst_158 : f32 to vector<7x256xf32>
    %240 = tpu.concatenate %238, %239 in 0 : vector<1x256xf32>, vector<7x256xf32> -> vector<8x256xf32>
    %c0_159 = arith.constant 0 : index
    %c0_160 = arith.constant 0 : index
    %241 = vector.load %arg6[%c0_159, %c0_160] : memref<256x64xf32, #tpu.memory_space<vmem>>, vector<256x64xf32>
    %cst_161 = arith.constant dense<0.000000e+00> : vector<8x64xf32>
    %242 = tpu.matmul %240, %241, %cst_161 {dimension_numbers = #tpu.dot_dimension_numbers<[1], [0], [0], [1], [0, 0, 1, 1], [], []>} : vector<8x256xf32>, vector<256x64xf32>, vector<8x64xf32> -> vector<8x64xf32>
    %243 = vector.extract_strided_slice %242 {offsets = [0, 0], sizes = [1, 64], strides = [1, 1]} : vector<8x64xf32> to vector<1x64xf32>
    %c0_162 = arith.constant 0 : index
    %c0_163 = arith.constant 0 : index
    %244 = vector.load %arg7[%c0_162, %c0_163] : memref<1x64xf32, #tpu.memory_space<vmem>>, vector<1x64xf32>
    %245 = arith.addf %243, %244 : vector<1x64xf32>
    %cst_164 = arith.constant 0.000000e+00 : f32
    %246 = vector.broadcast %cst_164 : f32 to vector<1x64xf32>
    %247 = arith.maximumf %245, %246 : vector<1x64xf32>
    %c0_165 = arith.constant 0 : index
    %c0_166 = arith.constant 0 : index
    %248 = vector.load %arg8[%c0_165, %c0_166] : memref<1x64xf32, #tpu.memory_space<vmem>>, vector<1x64xf32>
    %249 = arith.mulf %247, %248 : vector<1x64xf32>
    %cst_167 = arith.constant dense<0.000000e+00> : vector<1xf32>
    %250 = vector.multi_reduction <add>, %249, %cst_167 [1] : vector<1x64xf32> to vector<1xf32>
    %251 = vector.shape_cast %250 : vector<1xf32> to vector<1x1xf32>
    %c0_168 = arith.constant 0 : index
    %c0_169 = arith.constant 0 : index
    %252 = vector.load %arg9[%c0_168, %c0_169] : memref<1x1xf32, #tpu.memory_space<vmem>>, vector<1x1xf32>
    %253 = arith.addf %251, %252 : vector<1x1xf32>
    %c0_170 = arith.constant 0 : index
    %c0_171 = arith.constant 0 : index
    %c0_172 = arith.constant 0 : index
    %254 = vector.load %arg10[%c0_170, %c0_171, %c0_172] : memref<1x1x1xf32, #tpu.memory_space<vmem>>, vector<1x1x1xf32>
    %255 = vector.shape_cast %254 : vector<1x1x1xf32> to vector<1x1xf32>
    %256 = vector.shape_cast %253 : vector<1x1xf32> to vector<1x1x1xf32>
    tpu.vector_store %arg10[%c0_170, %c0_171, %c0_172], %256 {strides = array<i32>} : memref<1x1x1xf32, #tpu.memory_space<vmem>>, vector<1x1x1xf32>,
    return
  }
  func.func @transform_0(%arg0: i32) -> (i32, i32, i32) {
    %c0_i32 = arith.constant 0 : i32
    %c0_i32_0 = arith.constant 0 : i32
    %c0_i32_1 = arith.constant 0 : i32
    return %arg0, %c0_i32, %c0_i32_0 : i32, i32, i32
  }
  func.func @transform_1(%arg0: i32) -> (i32, i32, i32) {
    %c0_i32 = arith.constant 0 : i32
    %c0_i32_0 = arith.constant 0 : i32
    %c0_i32_1 = arith.constant 0 : i32
    %c0_i32_2 = arith.constant 0 : i32
    return %c0_i32, %c0_i32_0, %c0_i32_1 : i32, i32, i32
  }
  func.func @transform_2(%arg0: i32) -> (i32, i32) {
    %c0_i32 = arith.constant 0 : i32
    %c0_i32_0 = arith.constant 0 : i32
    %c0_i32_1 = arith.constant 0 : i32
    return %c0_i32, %c0_i32_0 : i32, i32
  }
  func.func @transform_3(%arg0: i32) -> (i32, i32, i32) {
    %c0_i32 = arith.constant 0 : i32
    %c0_i32_0 = arith.constant 0 : i32
    %c0_i32_1 = arith.constant 0 : i32
    %c0_i32_2 = arith.constant 0 : i32
    return %c0_i32, %c0_i32_0, %c0_i32_1 : i32, i32, i32
  }
  func.func @transform_4(%arg0: i32) -> (i32, i32) {
    %c0_i32 = arith.constant 0 : i32
    %c0_i32_0 = arith.constant 0 : i32
    %c0_i32_1 = arith.constant 0 : i32
    return %c0_i32, %c0_i32_0 : i32, i32
  }
  func.func @transform_5(%arg0: i32) -> (i32, i32) {
    %c0_i32 = arith.constant 0 : i32
    %c0_i32_0 = arith.constant 0 : i32
    %c0_i32_1 = arith.constant 0 : i32
    return %c0_i32, %c0_i32_0 : i32, i32
  }
  func.func @transform_6(%arg0: i32) -> (i32, i32) {
    %c0_i32 = arith.constant 0 : i32
    %c0_i32_0 = arith.constant 0 : i32
    %c0_i32_1 = arith.constant 0 : i32
    return %c0_i32, %c0_i32_0 : i32, i32
  }
  func.func @transform_7(%arg0: i32) -> (i32, i32) {
    %c0_i32 = arith.constant 0 : i32
    %c0_i32_0 = arith.constant 0 : i32
    %c0_i32_1 = arith.constant 0 : i32
    return %c0_i32, %c0_i32_0 : i32, i32
  }
  func.func @transform_8(%arg0: i32) -> (i32, i32) {
    %c0_i32 = arith.constant 0 : i32
    %c0_i32_0 = arith.constant 0 : i32
    %c0_i32_1 = arith.constant 0 : i32
    return %c0_i32, %c0_i32_0 : i32, i32
  }
  func.func @transform_9(%arg0: i32) -> (i32, i32, i32) {
    %c0_i32 = arith.constant 0 : i32
    %c0_i32_0 = arith.constant 0 : i32
    %c0_i32_1 = arith.constant 0 : i32
    return %arg0, %c0_i32, %c0_i32_0 : i32, i32, i32
  }
}

</mosaic_0001>

<bundles_post_ra>
// kernel: pafnucy_forward.1
= control target key start
LH: loop header
LB: loop body
LE: loop exit
PB: predicated region body
PF: predicated region fallthrough
CT: control target
= control target key end

     0   :  { %s4755_s11 = smov 0   ;;  %s5743_s0 = inlined_call_operand.vmem [shape: f32[2,104,40], index: 0, kind: input, shape index: {}]   ;;  %s5744_s1 = inlined_call_operand.vmem [shape: f32[9,40,128], index: 1, kind: input, shape index: {}]   ;;  %s5745_s2 = inlined_call_operand.vmem [shape: f32[1,128], index: 2, kind: input, shape index: {}]   ;;  %s5746_s3 = inlined_call_operand.vmem [shape: f32[9,96,128], index: 3, kind: input, shape index: {}]   ;;  %s5747_s4 = inlined_call_operand.vmem [shape: f32[1,128], index: 4, kind: input, shape index: {}]   ;;  %s5748_s5 = inlined_call_operand.vmem [shape: f32[256,64], index: 5, kind: input, shape index: {}]   ;;  %s5749_s6 = inlined_call_operand.vmem [shape: f32[1,64], index: 6, kind: input, shape index: {}]   ;;  %s5750_s7 = inlined_call_operand.vmem [shape: f32[1,64], index: 7, kind: input, shape index: {}]   ;;  %s5751_s8 = inlined_call_operand.<no memory space> [shape: f32[1,1], index: 8, kind: input, shape index: {}]   ;;  %s5752_s9 = inlined_call_operand.vmem [shape: f32[2,1,1], index: 9, kind: output, shape index: {}]  }
   0x1   :  { %v14_v0 = vstv %s5751_s8 }
   0x2   :  { %15 = vst [vmem:[#allocation5] sm:$0x1] %v14_v0 }
   0x3 LB: > { %s3231_s12 = sadd.s32 4294967295, %s4692_s11   ;;  %p3235_p0 = scmp.ge.s32.totalorder %s4692_s11, 1  ;;  %s4692_s11 = sphi %s4755_s11, %s21_s11  }
   0x4   : > { %p289_p1 = scmp.lt.s32.totalorder %s4692_s11, 3 }
   0x6   : > { %p290_p2 = pnand %p3235_p0, %p289_p1 }
   0x7   : > { %v3237_v1 = vld [vmem:[%s5744_s1 + $0x28] sm:$0xff] (!%p290_p2)  ;;  %v3238_v2 = vld [vmem:[%s5744_s1 + $0x30] sm:$0xff] (!%p290_p2)  ;;  %v3239_v3 = vld [vmem:[%s5744_s1 + $0x38] sm:$0xff] (!%p290_p2)  ;;  %p323_p3 = scmp.lt.s32.totalorder (!%p290_p2), %s3231_s12, 1  ;;  %vm362_vm0 = vcmask (!%p290_p2), 326656   ;;  %vm1887_vm1 = vcmask (!%p290_p2), 785408  }
   0x8   : > { %293 = sbr.rel (%p290_p2) target bundleno = 1731 (0x6c3), region = 56  ;;  %v4323_v4 = vpack.c.bf16 (!%p290_p2), %v3238_v2, %v3237_v1  ;;  %v3240_v5 = vld [vmem:[%s5744_s1 + $0x40] sm:$0xff] (!%p290_p2)  ;;  %v3241_v7 = vld [vmem:[%s5744_s1 + $0x48] sm:$0xff] (!%p290_p2)  ;;  %v343_v11 = vld [vmem:[%s5744_s1 + $0x10] sm:$0xff] (!%p290_p2)  ;;  %s4697_s30 = smov (!%p290_p2), 16   ;;  %vm4698_vm2 = vmmov (!%p290_p2), 0  }
   0x9   : > { %v4327_v6 = vpack.c.bf16 (!%p290_p2), %v3240_v5, %v3239_v3  ;;  %v341_v8 = vld [vmem:[%s5744_s1] sm:$0xff] (!%p290_p2)  ;;  %v342_v9 = vld [vmem:[%s5744_s1 + $0x8] sm:$0xff] (!%p290_p2)  ;;  %v344_v12 = vld [vmem:[%s5744_s1 + $0x18] sm:$0xff] (!%p290_p2)  ;;  %s4699_s15 = smov (!%p290_p2), 96   ;;  %vm1918_vm3 = vcmask (!%p290_p2), 130048   ;;  %vm1920_vm4 = vcmask (!%p290_p2), 261120  }
   0xa   : > { %4324 = vmatprep.subr.bf16.mxu0 (!%p290_p2), %v4323_v4  ;;  %v4331_v13 = vpack.c.bf16 (!%p290_p2), %v342_v9, %v341_v8  ;;  %v4335_v16 = vpack.c.bf16 (!%p290_p2), %v344_v12, %v343_v11  ;;  %v345_v19 = vld [vmem:[%s5744_s1 + $0x20] sm:$0xff] (!%p290_p2)  ;;  %v3262_v20 = vld [vmem:[%s5744_s1 + $0x50] sm:$0xff] (!%p290_p2)  ;;  %v3263_v21 = vld [vmem:[%s5744_s1 + $0x58] sm:$0xff] (!%p290_p2)  ;;  %vm1922_vm5 = vcmask (!%p290_p2), 392192   ;;  %vm1924_vm6 = vcmask (!%p290_p2), 523264   ;;  %s4701_s10 = smov (!%p290_p2), 32  }
   0xb   : > { %4326 = vmatpush3.bf16.msra.mxu0 (!%p290_p2), %v4323_v4  ;;  %v4339_v24 = vpack.c.bf16 (!%p290_p2), %v3263_v21, %v3262_v20  ;;  %v3264_v29 = vld [vmem:[%s5744_s1 + $0x60] sm:$0xff] (!%p290_p2)  ;;  %v3265_v30 = vld [vmem:[%s5744_s1 + $0x68] sm:$0xff] (!%p290_p2)  ;;  %v3266_v36 = vld [vmem:[%s5744_s1 + $0x70] sm:$0xff] (!%p290_p2)  ;;  %vm1926_vm7 = vcmask (!%p290_p2), 654336   ;;  %vm1928_vm8 = vcmask (!%p290_p2), 781312   ;;  %vm3066_vm9 = vcmask (!%p290_p2), 1040384  }
   0xc   : > { %4328 = vmatprep.subr.bf16.mxu0 (!%p290_p2), %v4327_v6  ;;  %v4343_v33 = vpack.c.bf16 (!%p290_p2), %v3265_v30, %v3264_v29  ;;  %v3277_v37 = vld [vmem:[%s5744_s1 + $0x78] sm:$0xff] (!%p290_p2)  ;;  %v3278_v38 = vld [vmem:[%s5744_s1 + $0x80] sm:$0xff] (!%p290_p2)  ;;  %v3279_v46 = vld [vmem:[%s5744_s1 + $0x88] sm:$0xff] (!%p290_p2)  ;;  %vm3176_vm10 = vcmask (!%p290_p2), 516096   ;;  %vm3182_vm11 = vcmask (!%p290_p2), 0  }
   0xd   : > { %v4347_v41 = vpack.c.bf16 (!%p290_p2), %v3278_v38, %v3277_v37  ;;  %v3280_v47 = vld [vmem:[%s5744_s1 + $0x90] sm:$0xff] (!%p290_p2)  ;;  %v3281_v53 = vld [vmem:[%s5744_s1 + $0x98] sm:$0xff] (!%p290_p2)  ;;  %v3292_v54 = vld [vmem:[%s5744_s1 + $0xa0] sm:$0xff] (!%p290_p2) }
   0xe   : > { %v4351_v50 = vpack.c.bf16 (!%p290_p2), %v3280_v47, %v3279_v46  ;;  %v3293_v55 = vld [vmem:[%s5744_s1 + $0xa8] sm:$0xff] (!%p290_p2)  ;;  %v3294_v62 = vld [vmem:[%s5744_s1 + $0xb0] sm:$0xff] (!%p290_p2)  ;;  %v3295_v63 = vld [vmem:[%s5744_s1 + $0xb8] sm:$0xff] (!%p290_p2) }
   0xf   : > { %s5754_s12 = smov (!%p323_p3, %s3231_s12), 1  ;;  %4330 = vmatpush3.bf16.msra.mxu0 %v4327_v6  ;;  %v4355_v58 = vpack.c.bf16 %v3293_v55, %v3292_v54  ;;  %v4359_v0 = vpack.c.bf16 %v3295_v63, %v3294_v62  ;;  %v3296_v1 = vld [vmem:[%s5744_s1 + $0xc0] sm:$0xff]  ;;  %v3307_v2 = vld [vmem:[%s5744_s1 + $0xc8] sm:$0xff]  ;;  %v3308_v3 = vld [vmem:[%s5744_s1 + $0xd0] sm:$0xff] }
  0x10   : > { %s4669_s20 = smul.u32 104, %s5754_s12  ;;  %3809 = vmatprep.subr.mxu0 %v3241_v7  ;;  %v4363_v4 = vpack.c.bf16 %v3308_v3, %v3307_v2  ;;  %v3310_v8 = vld [vmem:[%s5744_s1 + $0xe0] sm:$0xff]  ;;  %s330_s18 = scalar_lea.vmem %s5752_s9, %s5754_s12 }
  0x12   : > { %s4784_s25 = scalar_lea.vmem %s5743_s0, %s4669_s20 }
  0x13   : > { %v346_v10 = vld [vmem:[%s4784_s25 + $0x1] sm:$0xff]  ;;  %v347_v14 = vld [vmem:[%s4784_s25 + $0x9] sm:$0xff]  ;;  %v348_v15 = vld [vmem:[%s4784_s25 + $0x11] sm:$0xff]  ;;  %3810 = vmatpush3.msra.mxu0 %v3241_v7 }
  0x14   : > { %3811 = vmatprep.mubr.msk.f32.mxu0 %vm362_vm0, %v346_v10  ;;  %4332 = vmatprep.subr.bf16.mxu0 %v4331_v13  ;;  %v349_v17 = vld [vmem:[%s4784_s25 + $0x19] sm:$0xff]  ;;  %v350_v18 = vld [vmem:[%s4784_s25 + $0x21] sm:$0xff]  ;;  %v351_v22 = vld [vmem:[%s4784_s25 + $0x29] sm:$0xff] }
  0x15   : > { %3812 = vmatmul.mubr.msk.f32.vlgmr.msra.gmra.mrb[0].mxu0 %vm362_vm0, %v347_v14  ;;  %v352_v23 = vld [vmem:[%s4784_s25 + $0x31] sm:$0xff]  ;;  %v353_v25 = vld [vmem:[%s4784_s25 + $0x39] sm:$0xff]  ;;  %v354_v26 = vld [vmem:[%s4784_s25 + $0x41] sm:$0xff] }
  0x16   : > { %4334 = vmatpush3.bf16.msra.mxu0 %v4331_v13  ;;  %3814 = vmatprep.mubr.msk.f32.mxu0 %vm362_vm0, %v348_v15  ;;  %v355_v27 = vld [vmem:[%s4784_s25 + $0x49] sm:$0xff]  ;;  %v331_v28 = vld [vmem:[%s4784_s25] sm:$0xff]  ;;  %v334_v34 = vld [vmem:[%s4784_s25 + $0x18] sm:$0xff] }
  0x17   : > { %4336 = vmatprep.subr.bf16.mxu0 %v4335_v16  ;;  %v332_v31 = vld [vmem:[%s4784_s25 + $0x8] sm:$0xff]  ;;  %v333_v32 = vld [vmem:[%s4784_s25 + $0x10] sm:$0xff]  ;;  %v335_v35 = vld [vmem:[%s4784_s25 + $0x20] sm:$0xff] }
  0x18   : > { %v336_v39 = vld [vmem:[%s4784_s25 + $0x28] sm:$0xff]  ;;  %v337_v40 = vld [vmem:[%s4784_s25 + $0x30] sm:$0xff]  ;;  %v338_v42 = vld [vmem:[%s4784_s25 + $0x38] sm:$0xff] }
  0x19   : > { %3815 = vmatmul.mubr.msk.f32.gmra.mrb[2].mxu0 %vm362_vm0, %v349_v17  ;;  %v339_v43 = vld [vmem:[%s4784_s25 + $0x40] sm:$0xff]  ;;  %v340_v44 = vld [vmem:[%s4784_s25 + $0x48] sm:$0xff]  ;;  %v655_v49 = vld [vmem:[%s4784_s25 + $0x12] sm:$0xff] }
  0x1a   : > { %3817 = vmatprep.mubr.msk.f32.mxu0 %vm362_vm0, %v350_v18  ;;  %4338 = vmatpush3.bf16.msra.mxu0 %v4335_v16  ;;  %v653_v45 = vld [vmem:[%s4784_s25 + $0x2] sm:$0xff]  ;;  %v654_v48 = vld [vmem:[%s4784_s25 + $0xa] sm:$0xff]  ;;  %v656_v51 = vld [vmem:[%s4784_s25 + $0x1a] sm:$0xff] }
  0x1b   : > { %3834 = vmatprep.subr.mxu0 %v345_v19  ;;  %v657_v52 = vld [vmem:[%s4784_s25 + $0x22] sm:$0xff]  ;;  %v658_v56 = vld [vmem:[%s4784_s25 + $0x2a] sm:$0xff]  ;;  %v659_v57 = vld [vmem:[%s4784_s25 + $0x32] sm:$0xff] }
  0x1c   : > { %v660_v59 = vld [vmem:[%s4784_s25 + $0x3a] sm:$0xff]  ;;  %v661_v60 = vld [vmem:[%s4784_s25 + $0x42] sm:$0xff]  ;;  %v662_v61 = vld [vmem:[%s4784_s25 + $0x4a] sm:$0xff] }
  0x1d   : > { %3818 = vmatmul.mubr.msk.f32.gmra.mrb[4].mxu0 %vm362_vm0, %v351_v22  ;;  %v833_v5 = vld [vmem:[%s4784_s25 + $0x52] sm:$0xff]  ;;  %v997_v10 = vld [vmem:[%s4784_s25 + $0x1b] sm:$0xff]  ;;  %v998_v12 = vld [vmem:[%s4784_s25 + $0x23] sm:$0xff] }
  0x1e   : > { %3820 = vmatprep.mubr.msk.f32.mxu0 %vm362_vm0, %v352_v23  ;;  %3835 = vmatpush3.msra.mxu0 %v345_v19  ;;  %v995_v6 = vld [vmem:[%s4784_s25 + $0xb] sm:$0xff]  ;;  %v3309_v7 = vld [vmem:[%s5744_s1 + $0xd8] sm:$0xff]  ;;  %v1002_v20 = vld [vmem:[%s4784_s25 + $0x43] sm:$0xff] }
  0x1f   : > { %4340 = vmatprep.subr.bf16.mxu0 %v4339_v24  ;;  %v996_v9 = vld [vmem:[%s4784_s25 + $0x13] sm:$0xff]  ;;  %v4367_v11 = vpack.c.bf16 %v3310_v8, %v3309_v7  ;;  %v999_v13 = vld [vmem:[%s4784_s25 + $0x2b] sm:$0xff]  ;;  %v1001_v18 = vld [vmem:[%s4784_s25 + $0x3b] sm:$0xff] }
  0x20   : > { %v3311_v14 = vld [vmem:[%s5744_s1 + $0xe8] sm:$0xff]  ;;  %v3322_v15 = vld [vmem:[%s5744_s1 + $0xf0] sm:$0xff]  ;;  %v3323_v16 = vld [vmem:[%s5744_s1 + $0xf8] sm:$0xff] }
  0x21   : > { %3821 = vmatmul.mubr.msk.f32.gmra.mrb[6].mxu0 %vm362_vm0, %v353_v25  ;;  %v1000_v17 = vld [vmem:[%s4784_s25 + $0x33] sm:$0xff]  ;;  %v4371_v19 = vpack.c.bf16 %v3323_v16, %v3322_v15  ;;  %v1003_v21 = vld [vmem:[%s4784_s25 + $0x4b] sm:$0xff]  ;;  %v1346_v47 = vld [vmem:[%s4784_s25 + $0x5c] sm:$0xff] }
  0x22   : > { %3823 = vmatprep.mubr.msk.f32.mxu0 %vm362_vm0, %v354_v26  ;;  %v1004_v22 = vld [vmem:[%s4784_s25 + $0x53] sm:$0xff]  ;;  %v3325_v25 = vld [vmem:[%s5744_s1 + $0x108] sm:$0xff]  ;;  %v1680_v63 = vld [vmem:[%s4784_s25 + $0x1e] sm:$0xff] }
  0x23   : > { %v1166_v23 = vld [vmem:[%s4784_s25 + $0xc] sm:$0xff]  ;;  %v1167_v26 = vld [vmem:[%s4784_s25 + $0x14] sm:$0xff]  ;;  %v1169_v29 = vld [vmem:[%s4784_s25 + $0x24] sm:$0xff] }
  0x24   : > { %v1170_v30 = vld [vmem:[%s4784_s25 + $0x2c] sm:$0xff]  ;;  %v1173_v37 = vld [vmem:[%s4784_s25 + $0x44] sm:$0xff]  ;;  %v1512_v55 = vld [vmem:[%s4784_s25 + $0x35] sm:$0xff] }
  0x25   : > { %3824 = vmatmul.mubr.msk.f32.gmra.mrb[8].mxu0 %vm362_vm0, %v355_v27  ;;  %v1168_v27 = vld [vmem:[%s4784_s25 + $0x1c] sm:$0xff]  ;;  %v1174_v38 = vld [vmem:[%s4784_s25 + $0x4c] sm:$0xff] }
  0x26   : > { %3836 = vmatprep.mubr.msk.f32.mxu0 %vm362_vm0, %v331_v28  ;;  %v1511_v54 = vld [vmem:[%s4784_s25 + $0x2d] sm:$0xff]  ;;  %v1679_v62 = vld [vmem:[%s4784_s25 + $0x16] sm:$0xff]  ;;  %v1684_v3 = vld [vmem:[%s4784_s25 + $0x3e] sm:$0xff] }
  0x27   : > { %v1683_v2 = vld [vmem:[%s4784_s25 + $0x36] sm:$0xff]  ;;  %v1688_v7 = vld [vmem:[%s4784_s25 + $0x5e] sm:$0xff] }
  0x28   : > { %v3367_v8 = vld [vmem:[%s5745_s2] ss:$0 sm:$0xff] }
  0x29   : > { %3837 = vmatmul.mubr.msk.f32.vlgmr.msra.gmra.mrb[0].mxu0 %vm362_vm0, %v332_v31  ;;  %v3326_v31 = vld [vmem:[%s5744_s1 + $0x110] sm:$0xff] }
  0x2a   : > { %4342 = vmatpush3.bf16.msra.mxu0 %v4339_v24  ;;  %3839 = vmatprep.mubr.msk.f32.mxu0 %vm362_vm0, %v333_v32  ;;  %v3324_v24 = vld [vmem:[%s5744_s1 + $0x100] sm:$0xff]  ;;  %v3337_v32 = vld [vmem:[%s5744_s1 + $0x118] sm:$0xff] }
  0x2b   : > { %4344 = vmatprep.subr.bf16.mxu0 %v4343_v33  ;;  %v4375_v28 = vpack.c.bf16 %v3325_v25, %v3324_v24 }
  0x2d   : > { %3840 = vmatmul.mubr.msk.f32.gmra.mrb[2].mxu0 %vm362_vm0, %v334_v34  ;;  %v1171_v34 = vld [vmem:[%s4784_s25 + $0x34] sm:$0xff] }
  0x2e   : > { %3842 = vmatprep.mubr.msk.f32.mxu0 %vm362_vm0, %v335_v35  ;;  %4346 = vmatpush3.bf16.msra.mxu0 %v4343_v33  ;;  %v3338_v33 = vld [vmem:[%s5744_s1 + $0x120] sm:$0xff] }
  0x2f   : > { %3859 = vmatprep.subr.mxu0 %v3266_v36  ;;  %v1172_v35 = vld [vmem:[%s4784_s25 + $0x3c] sm:$0xff] }
  0x31   : > { %3843 = vmatmul.mubr.msk.f32.gmra.mrb[4].mxu0 %vm362_vm0, %v336_v39  ;;  %v1175_v39 = vld [vmem:[%s4784_s25 + $0x54] sm:$0xff] }
  0x32   : > { %3845 = vmatprep.mubr.msk.f32.mxu0 %vm362_vm0, %v337_v40  ;;  %3860 = vmatpush3.msra.mxu0 %v3266_v36  ;;  %v4379_v36 = vpack.c.bf16 %v3338_v33, %v3337_v32  ;;  %v3339_v40 = vld [vmem:[%s5744_s1 + $0x128] sm:$0xff] }
  0x33   : > { %4348 = vmatprep.subr.bf16.mxu0 %v4347_v41 }
  0x35   : > { %3846 = vmatmul.mubr.msk.f32.gmra.mrb[6].mxu0 %vm362_vm0, %v338_v42 }
  0x36   : > { %3848 = vmatprep.mubr.msk.f32.mxu0 %vm362_vm0, %v339_v43  ;;  %v3341_v43 = vld [vmem:[%s5744_s1 + $0x138] sm:$0xff] }
  0x39   : > { %3849 = vmatmul.mubr.msk.f32.gmra.mrb[8].mxu0 %vm362_vm0, %v340_v44  ;;  %v3352_v44 = vld [vmem:[%s5744_s1 + $0x140] sm:$0xff] }
  0x3a   : > { %3861 = vmatprep.mubr.msk.f32.mxu0 %vm362_vm0, %v653_v45  ;;  %v3353_v45 = vld [vmem:[%s5744_s1 + $0x148] sm:$0xff] }
  0x3b   : > { %v4387_v46 = vpack.c.bf16 %v3353_v45, %v3352_v44 }
  0x3d   : > { %3862 = vmatmul.mubr.msk.f32.vlgmr.msra.gmra.mrb[0].mxu0 %vm362_vm0, %v654_v48 }
  0x3e   : > { %4350 = vmatpush3.bf16.msra.mxu0 %v4347_v41  ;;  %3864 = vmatprep.mubr.msk.f32.mxu0 %vm362_vm0, %v655_v49  ;;  %v3340_v41 = vld [vmem:[%s5744_s1 + $0x130] sm:$0xff] }
  0x3f   : > { %4352 = vmatprep.subr.bf16.mxu0 %v4351_v50  ;;  %v4383_v42 = vpack.c.bf16 %v3340_v41, %v3339_v40 }
  0x41   : > { %3865 = vmatmul.mubr.msk.f32.gmra.mrb[2].mxu0 %vm362_vm0, %v656_v51 }
  0x42   : > { %3867 = vmatprep.mubr.msk.f32.mxu0 %vm362_vm0, %v657_v52  ;;  %4354 = vmatpush3.bf16.msra.mxu0 %v4351_v50  ;;  %v3355_v50 = vld [vmem:[%s5744_s1 + $0x158] sm:$0xff] }
  0x43   : > { %3884 = vmatprep.subr.mxu0 %v3281_v53 }
  0x45   : > { %3868 = vmatmul.mubr.msk.f32.gmra.mrb[4].mxu0 %vm362_vm0, %v658_v56 }
  0x46   : > { %3870 = vmatprep.mubr.msk.f32.mxu0 %vm362_vm0, %v659_v57  ;;  %3885 = vmatpush3.msra.mxu0 %v3281_v53 }
  0x47   : > { %4356 = vmatprep.subr.bf16.mxu0 %v4355_v58 }
  0x49   : > { %3871 = vmatmul.mubr.msk.f32.gmra.mrb[6].mxu0 %vm362_vm0, %v660_v59 }
  0x4a   : > { %3873 = vmatprep.mubr.msk.f32.mxu0 %vm362_vm0, %v661_v60 }
  0x4d   : > { %3874 = vmatmul.mubr.msk.f32.gmra.mrb[8].mxu0 %vm362_vm0, %v662_v61 }
  0x4e   : > { %3886 = vmatprep.mubr.msk.f32.mxu0 %vm362_vm0, %v654_v48  ;;  %v1508_v48 = vld [vmem:[%s4784_s25 + $0x15] sm:$0xff] }
  0x51   : > { %3887 = vmatmul.mubr.msk.f32.vlgmr.msra.gmra.mrb[0].mxu0 %vm362_vm0, %v655_v49  ;;  %v3354_v49 = vld [vmem:[%s5744_s1 + $0x150] sm:$0xff] }
  0x52   : > { %4358 = vmatpush3.bf16.msra.mxu0 %v4355_v58  ;;  %3889 = vmatprep.mubr.msk.f32.mxu0 %vm362_vm0, %v656_v51  ;;  %v1509_v51 = vld [vmem:[%s4784_s25 + $0x1d] sm:$0xff]  ;;  %v4391_v53 = vpack.c.bf16 %v3355_v50, %v3354_v49  ;;  %v1514_v58 = vld [vmem:[%s4784_s25 + $0x45] sm:$0xff] }
  0x53   : > { %4360 = vmatprep.subr.bf16.mxu0 %v4359_v0 }
  0x55   : > { %3890 = vmatmul.mubr.msk.f32.gmra.mrb[2].mxu0 %vm362_vm0, %v657_v52  ;;  %v1510_v52 = vld [vmem:[%s4784_s25 + $0x25] sm:$0xff] }
  0x56   : > { %3892 = vmatprep.mubr.msk.f32.mxu0 %vm362_vm0, %v658_v56  ;;  %4362 = vmatpush3.bf16.msra.mxu0 %v4359_v0  ;;  %v3356_v56 = vld [vmem:[%s5744_s1 + $0x160] sm:$0xff] }
  0x57   : > { %3909 = vmatprep.subr.mxu0 %v3296_v1  ;;  %v1681_v0 = vld [vmem:[%s4784_s25 + $0x26] sm:$0xff] }
  0x59   : > { %3893 = vmatmul.mubr.msk.f32.gmra.mrb[4].mxu0 %vm362_vm0, %v659_v57  ;;  %v1513_v57 = vld [vmem:[%s4784_s25 + $0x3d] sm:$0xff] }
  0x5a   : > { %3895 = vmatprep.mubr.msk.f32.mxu0 %vm362_vm0, %v660_v59  ;;  %3910 = vmatpush3.msra.mxu0 %v3296_v1  ;;  %v1515_v59 = vld [vmem:[%s4784_s25 + $0x4d] sm:$0xff] }
  0x5b   : > { %4364 = vmatprep.subr.bf16.mxu0 %v4363_v4  ;;  %v1682_v1 = vld [vmem:[%s4784_s25 + $0x2e] sm:$0xff] }
  0x5d   : > { %3896 = vmatmul.mubr.msk.f32.gmra.mrb[6].mxu0 %vm362_vm0, %v661_v60  ;;  %v1516_v60 = vld [vmem:[%s4784_s25 + $0x55] sm:$0xff] }
  0x5e   : > { %3898 = vmatprep.mubr.msk.f32.mxu0 %vm362_vm0, %v662_v61  ;;  %v1517_v61 = vld [vmem:[%s4784_s25 + $0x5d] sm:$0xff] }
  0x61   : > { %3899 = vmatmul.mubr.msk.f32.gmra.mrb[8].mxu0 %vm362_vm0, %v833_v5  ;;  %v1686_v5 = vld [vmem:[%s4784_s25 + $0x4e] sm:$0xff] }
  0x62   : > { %3911 = vmatprep.mubr.msk.f32.mxu0 %vm362_vm0, %v995_v6  ;;  %v1687_v6 = vld [vmem:[%s4784_s25 + $0x56] sm:$0xff] }
  0x65   : > { %3912 = vmatmul.mubr.msk.f32.vlgmr.msra.gmra.mrb[0].mxu0 %vm362_vm0, %v996_v9 }
  0x66   : > { %4366 = vmatpush3.bf16.msra.mxu0 %v4363_v4  ;;  %3914 = vmatprep.mubr.msk.f32.mxu0 %vm362_vm0, %v997_v10  ;;  %v1685_v4 = vld [vmem:[%s4784_s25 + $0x46] sm:$0xff]  ;;  %s4694_s25 = smov 112  }
  0x67   : > { %4368 = vmatprep.subr.bf16.mxu0 %v4367_v11 }
  0x69   : > { %3915 = vmatmul.mubr.msk.f32.gmra.mrb[2].mxu0 %vm362_vm0, %v998_v12 }
  0x6a   : > { %3917 = vmatprep.mubr.msk.f32.mxu0 %vm362_vm0, %v999_v13  ;;  %4370 = vmatpush3.bf16.msra.mxu0 %v4367_v11 }
  0x6b   : > { %3934 = vmatprep.subr.mxu0 %v3311_v14 }
  0x6d   : > { %3918 = vmatmul.mubr.msk.f32.gmra.mrb[4].mxu0 %vm362_vm0, %v1000_v17 }
  0x6e   : > { %3920 = vmatprep.mubr.msk.f32.mxu0 %vm362_vm0, %v1001_v18  ;;  %3935 = vmatpush3.msra.mxu0 %v3311_v14 }
  0x6f   : > { %4372 = vmatprep.subr.bf16.mxu0 %v4371_v19 }
  0x71   : > { %3921 = vmatmul.mubr.msk.f32.gmra.mrb[6].mxu0 %vm362_vm0, %v1002_v20 }
  0x72   : > { %3923 = vmatprep.mubr.msk.f32.mxu0 %vm362_vm0, %v1003_v21 }
  0x75   : > { %3924 = vmatmul.mubr.msk.f32.gmra.mrb[8].mxu0 %vm362_vm0, %v1004_v22 }
  0x76   : > { %3936 = vmatprep.mubr.msk.f32.mxu0 %vm362_vm0, %v1166_v23 }
  0x79   : > { %3937 = vmatmul.mubr.msk.f32.vlgmr.msra.gmra.mrb[0].mxu0 %vm362_vm0, %v1167_v26 }
  0x7a   : > { %4374 = vmatpush3.bf16.msra.mxu0 %v4371_v19  ;;  %3939 = vmatprep.mubr.msk.f32.mxu0 %vm362_vm0, %v1168_v27 }
  0x7b   : > { %4376 = vmatprep.subr.bf16.mxu0 %v4375_v28 }
  0x7d   : > { %3940 = vmatmul.mubr.msk.f32.gmra.mrb[2].mxu0 %vm362_vm0, %v1169_v29 }
  0x7e   : > { %3942 = vmatprep.mubr.msk.f32.mxu0 %vm362_vm0, %v1170_v30  ;;  %4378 = vmatpush3.bf16.msra.mxu0 %v4375_v28 }
  0x7f   : > { %3959 = vmatprep.subr.mxu0 %v3326_v31 }
  0x81   : > { %3943 = vmatmul.mubr.msk.f32.gmra.mrb[4].mxu0 %vm362_vm0, %v1171_v34 }
  0x82   : > { %3945 = vmatprep.mubr.msk.f32.mxu0 %vm362_vm0, %v1172_v35  ;;  %3960 = vmatpush3.msra.mxu0 %v3326_v31 }
  0x83   : > { %4380 = vmatprep.subr.bf16.mxu0 %v4379_v36 }
  0x85   : > { %3946 = vmatmul.mubr.msk.f32.gmra.mrb[6].mxu0 %vm362_vm0, %v1173_v37 }
  0x86   : > { %3948 = vmatprep.mubr.msk.f32.mxu0 %vm362_vm0, %v1174_v38 }
  0x89   : > { %3949 = vmatmul.mubr.msk.f32.gmra.mrb[8].mxu0 %vm362_vm0, %v1175_v39 }
  0x8a   : > { %3961 = vmatprep.mubr.msk.f32.mxu0 %vm362_vm0, %v1167_v26 }
  0x8d   : > { %3962 = vmatmul.mubr.msk.f32.vlgmr.msra.gmra.mrb[0].mxu0 %vm362_vm0, %v1168_v27 }
  0x8e   : > { %4382 = vmatpush3.bf16.msra.mxu0 %v4379_v36  ;;  %3964 = vmatprep.mubr.msk.f32.mxu0 %vm362_vm0, %v1169_v29 }
  0x8f   : > { %4384 = vmatprep.subr.bf16.mxu0 %v4383_v42 }
  0x91   : > { %3965 = vmatmul.mubr.msk.f32.gmra.mrb[2].mxu0 %vm362_vm0, %v1170_v30 }
  0x92   : > { %3967 = vmatprep.mubr.msk.f32.mxu0 %vm362_vm0, %v1171_v34  ;;  %4386 = vmatpush3.bf16.msra.mxu0 %v4383_v42 }
  0x93   : > { %3984 = vmatprep.subr.mxu0 %v3341_v43 }
  0x95   : > { %3968 = vmatmul.mubr.msk.f32.gmra.mrb[4].mxu0 %vm362_vm0, %v1172_v35 }
  0x96   : > { %3970 = vmatprep.mubr.msk.f32.mxu0 %vm362_vm0, %v1173_v37  ;;  %3985 = vmatpush3.msra.mxu0 %v3341_v43 }
  0x97   : > { %4388 = vmatprep.subr.bf16.mxu0 %v4387_v46 }
  0x99   : > { %3971 = vmatmul.mubr.msk.f32.gmra.mrb[6].mxu0 %vm362_vm0, %v1174_v38 }
  0x9a   : > { %3973 = vmatprep.mubr.msk.f32.mxu0 %vm362_vm0, %v1175_v39 }
  0x9d   : > { %3974 = vmatmul.mubr.msk.f32.gmra.mrb[8].mxu0 %vm362_vm0, %v1346_v47 }
  0x9e   : > { %3986 = vmatprep.mubr.msk.f32.mxu0 %vm362_vm0, %v1508_v48 }
  0xa1   : > { %3987 = vmatmul.mubr.msk.f32.vlgmr.msra.gmra.mrb[0].mxu0 %vm362_vm0, %v1509_v51 }
  0xa2   : > { %4390 = vmatpush3.bf16.msra.mxu0 %v4387_v46  ;;  %3989 = vmatprep.mubr.msk.f32.mxu0 %vm362_vm0, %v1510_v52 }
  0xa3   : > { %4392 = vmatprep.subr.bf16.mxu0 %v4391_v53 }
  0xa5   : > { %3990 = vmatmul.mubr.msk.f32.gmra.mrb[2].mxu0 %vm362_vm0, %v1511_v54 }
  0xa6   : > { %3992 = vmatprep.mubr.msk.f32.mxu0 %vm362_vm0, %v1512_v55  ;;  %4394 = vmatpush3.bf16.msra.mxu0 %v4391_v53 }
  0xa7   : > { %4009 = vmatprep.subr.mxu0 %v3356_v56 }
  0xa9   : > { %3993 = vmatmul.mubr.msk.f32.gmra.mrb[4].mxu0 %vm362_vm0, %v1513_v57 }
  0xaa   : > { %3995 = vmatprep.mubr.msk.f32.mxu0 %vm362_vm0, %v1514_v58  ;;  %4010 = vmatpush3.msra.mxu0 %v3356_v56 }
  0xad   : > { %3996 = vmatmul.mubr.msk.f32.gmra.mrb[6].mxu0 %vm362_vm0, %v1515_v59 }
  0xae   : > { %3998 = vmatprep.mubr.msk.f32.mxu0 %vm362_vm0, %v1516_v60  ;;  %v3368_v60 = vld [vmem:[%s5746_s3 + $0x60] sm:$0xff] }
  0xb1   : > { %3999 = vmatmul.mubr.msk.f32.gmra.mrb[8].mxu0 %vm362_vm0, %v1517_v61  ;;  %v3369_v61 = vld [vmem:[%s5746_s3 + $0x68] sm:$0xff] }
  0xb2   : > { %4011 = vmatprep.mubr.msk.f32.mxu0 %vm362_vm0, %v1679_v62  ;;  %v4695_v62 = vmov 0.0|0.0  }
  0xb3   : > { %4395 = vmatprep.subr.bf16.mxu1 %v4695_v62  ;;  %4539 = vmatprep.subr.bf16.mxu0 %v4695_v62 }
  0xb5   : > { %4012 = vmatmul.mubr.msk.f32.vlgmr.msra.gmra.mrb[0].mxu0 %vm362_vm0, %v1680_v63  ;;  %v4396_v63 = vpack.c.bf16 %v3369_v61, %v3368_v60  ;;  %v2029_v60 = vld [vmem:[%s5746_s3] sm:$0xff]  ;;  %v2030_v61 = vld [vmem:[%s5746_s3 + $0x8] sm:$0xff] }
  0xb6   : > { %4014 = vmatprep.mubr.msk.f32.mxu0 %vm362_vm0, %v1681_v0  ;;  %v3370_v0 = vld [vmem:[%s5746_s3 + $0x70] sm:$0xff] }
  0xb7   : > { %4397 = vmatpush3.bf16.msra.mxu1 %v4396_v63 }
  0xb8   : > { %4398 = vmatprep.subr.bf16.mxu1 %v4695_v62 }
  0xb9   : > { %4015 = vmatmul.mubr.msk.f32.gmra.mrb[2].mxu0 %vm362_vm0, %v1682_v1  ;;  %v3371_v1 = vld [vmem:[%s5746_s3 + $0x78] sm:$0xff] }
  0xba   : > { %4017 = vmatprep.mubr.msk.f32.mxu0 %vm362_vm0, %v1683_v2  ;;  %v4399_v2 = vpack.c.bf16 %v3371_v1, %v3370_v0 }
  0xbc   : > { %4400 = vmatpush3.bf16.msra.mxu1 %v4399_v2 }
  0xbd   : > { %4018 = vmatmul.mubr.msk.f32.gmra.mrb[4].mxu0 %vm362_vm0, %v1684_v3  ;;  %v3372_v3 = vld [vmem:[%s5746_s3 + $0x80] sm:$0xff]  ;;  %4401 = vmatprep.subr.bf16.mxu1 %v4695_v62 }
  0xbe   : > { %4020 = vmatprep.mubr.msk.f32.mxu0 %vm362_vm0, %v1685_v4  ;;  %v3373_v4 = vld [vmem:[%s5746_s3 + $0x88] sm:$0xff] }
  0xc1   : > { %4021 = vmatmul.mubr.msk.f32.gmra.mrb[6].mxu0 %vm362_vm0, %v1686_v5  ;;  %v4402_v5 = vpack.c.bf16 %v3373_v4, %v3372_v3  ;;  %v4414_v3 = vpack.c.bf16 %v2030_v61, %v2029_v60 }
  0xc2   : > { %4023 = vmatprep.mubr.msk.f32.mxu0 %vm362_vm0, %v1687_v6  ;;  %v3374_v6 = vld [vmem:[%s5746_s3 + $0x90] sm:$0xff] }
  0xc3   : > { %4403 = vmatpush3.bf16.msra.mxu1 %v4402_v5 }
  0xc4   : > { %4404 = vmatprep.subr.bf16.mxu1 %v4695_v62 }
  0xc5   : > { %4024 = vmatmul.mubr.msk.f32.gmra.mrb[8].mxu0 %vm362_vm0, %v1688_v7  ;;  %v3375_v7 = vld [vmem:[%s5746_s3 + $0x98] sm:$0xff] }
 0x188   : > { %v4013_v9 = vpop.f32.mrb[0].mxu0 }
 0x189   : > { %v1858_v10 = vadd.f32 %v4013_v9, %v3367_v8  ;;  %v1791_v11 = vpop.f32.mrb[1].mxu0  ;;  %v4696_v9 = vmov 0.0  }
 0x18a   : > { %v1857_v12 = vadd.f32 %v3367_v8, %v1791_v11  ;;  %1888 = vst.msk [vmem:[#allocation3] sm:$0xff] %vm1887_vm1, %v4696_v9  ;;  %1889 = vst.msk [vmem:[#allocation3 + $0x8] sm:$0xff] %vm1887_vm1, %v4696_v9  ;;  %v3477_v11 = vld [vmem:[%s5746_s3 + $0x308] sm:$0xff]  ;;  %4050 = vmatprep.mubr.msk.f32.mxu1 %vm4698_vm2, %v4696_v9  ;;  %4314 = vmatprep.mubr.msk.f32.mxu0 %vm4698_vm2, %v4696_v9 }
 0x18b   : > { %v1868_v13 = vmax.f32 %v1858_v10, 0.0  ;;  %1890 = vst.msk [vmem:[#allocation3 + $0x10] sm:$0xff] %vm1887_vm1, %v4696_v9  ;;  %1891 = vst.msk [vmem:[#allocation3 + $0x18] sm:$0xff] %vm1887_vm1, %v4696_v9  ;;  %v3476_v10 = vld [vmem:[%s5746_s3 + $0x300] sm:$0xff] }
 0x18c   : > { %v1867_v14 = vmax.f32 %v1857_v12, 0.0  ;;  %v4016_v15 = vpop.f32.mrb[2].mxu0  ;;  %1892 = vst.msk [vmem:[#allocation3 + $0x20] sm:$0xff] %vm1887_vm1, %v4696_v9  ;;  %v4540_v12 = vpack.c.bf16 %v3477_v11, %v3476_v10 }
 0x18d   : > { %1878 = vst [vmem:[#allocation2 + $0x8] sm:$0xff] %v1868_v13  ;;  %v1860_v16 = vadd.f32 %v4016_v15, %v3367_v8  ;;  %v1801_v17 = vpop.f32.mrb[3].mxu0  ;;  %v3376_v13 = vld [vmem:[%s5746_s3 + $0xa0] sm:$0xff] }
 0x18e   : > { %1877 = vst [vmem:[#allocation2] sm:$0xff] %v1867_v14  ;;  %v1859_v18 = vadd.f32 %v3367_v8, %v1801_v17  ;;  %v3377_v14 = vld [vmem:[%s5746_s3 + $0xa8] sm:$0xff]  ;;  %4541 = vmatpush3.bf16.msra.mxu0 %v4540_v12  ;;  %v3478_v17 = vld [vmem:[%s5746_s3 + $0x310] sm:$0xff] }
 0x18f   : > { %v1870_v19 = vmax.f32 %v1860_v16, 0.0  ;;  %v4408_v15 = vpack.c.bf16 %v3377_v14, %v3376_v13  ;;  %4542 = vmatprep.subr.bf16.mxu0 %v4695_v62 }
 0x190   : > { %v1869_v20 = vmax.f32 %v1859_v18, 0.0  ;;  %v4019_v21 = vpop.f32.mrb[4].mxu0  ;;  %v3479_v18 = vld [vmem:[%s5746_s3 + $0x318] sm:$0xff] }
 0x191   : > { %1880 = vst [vmem:[#allocation2 + $0x18] sm:$0xff] %v1870_v19  ;;  %v1862_v22 = vadd.f32 %v4019_v21, %v3367_v8  ;;  %v1811_v23 = vpop.f32.mrb[5].mxu0  ;;  %v4543_v21 = vpack.c.bf16 %v3479_v18, %v3478_v17  ;;  %v2034_v17 = vld [vmem:[%s5746_s3 + $0x28] sm:$0xff] }
 0x192   : > { %1879 = vst [vmem:[#allocation2 + $0x10] sm:$0xff] %v1869_v20  ;;  %v1861_v24 = vadd.f32 %v3367_v8, %v1811_v23  ;;  %v3378_v23 = vld [vmem:[%s5746_s3 + $0xb0] sm:$0xff] }
 0x193   : > { %v1872_v25 = vmax.f32 %v1862_v22, 0.0  ;;  %4544 = vmatpush3.bf16.msra.mxu0 %v4543_v21  ;;  %v2035_v21 = vld [vmem:[%s5746_s3 + $0x30] sm:$0xff] }
 0x194   : > { %v1871_v26 = vmax.f32 %v1861_v24, 0.0  ;;  %v4022_v27 = vpop.f32.mrb[6].mxu0  ;;  %v3379_v24 = vld [vmem:[%s5746_s3 + $0xb8] sm:$0xff]  ;;  %4545 = vmatprep.subr.bf16.mxu0 %v4695_v62 }
 0x195   : > { %1882 = vst [vmem:[#allocation2 + $0x28] sm:$0xff] %v1872_v25  ;;  %v1864_v28 = vadd.f32 %v4022_v27, %v3367_v8  ;;  %v1821_v29 = vpop.f32.mrb[7].mxu0  ;;  %v1893_v32 = vld [vmem:[#allocation2] ss:$2 sm:$0xf]  ;;  %v4411_v25 = vpack.c.bf16 %v3379_v24, %v3378_v23 }
 0x196   : > { %1881 = vst [vmem:[#allocation2 + $0x20] sm:$0xff] %v1871_v26  ;;  %v1863_v30 = vadd.f32 %v3367_v8, %v1821_v29  ;;  %v1895_v35 = vld [vmem:[#allocation2 + $0x1] ss:$2 sm:$0xf] }
 0x197   : > { %v1874_v31 = vmax.f32 %v1864_v28, 0.0  ;;  %v1900_v43 = vmax.f32 %v1893_v32, %v1895_v35  ;;  %v3480_v27 = vld [vmem:[%s5746_s3 + $0x320] sm:$0xff]  ;;  %v3481_v28 = vld [vmem:[%s5746_s3 + $0x328] sm:$0xff] }
 0x198   : > { %v1873_v33 = vmax.f32 %v1863_v30, 0.0  ;;  %v4025_v34 = vpop.f32.mrb[8].mxu0  ;;  %v4546_v32 = vpack.c.bf16 %v3481_v28, %v3480_v27 }
 0x199   : > { %1884 = vst [vmem:[#allocation2 + $0x38] sm:$0xff] %v1874_v31  ;;  %v1866_v36 = vadd.f32 %v4025_v34, %v3367_v8  ;;  %v1831_v37 = vpop.f32.mrb[9].mxu0  ;;  %v1897_v38 = vld [vmem:[#allocation2 + $0xa] ss:$2 sm:$0xf]  ;;  %v3483_v34 = vld [vmem:[%s5746_s3 + $0x338] sm:$0xff] }
 0x19a   : > { %1883 = vst [vmem:[#allocation2 + $0x30] sm:$0xff] %v1873_v33  ;;  %v1865_v39 = vadd.f32 %v3367_v8, %v1831_v37  ;;  %v1899_v40 = vld [vmem:[#allocation2 + $0xb] ss:$2 sm:$0xf]  ;;  %v4405_v8 = vpack.c.bf16 %v3375_v7, %v3374_v6  ;;  %4547 = vmatpush3.bf16.msra.mxu0 %v4546_v32  ;;  %v2032_v7 = vld [vmem:[%s5746_s3 + $0x18] sm:$0xff] }
 0x19b   : > { %v1931_v41 = vld [vmem:[#allocation2 + $0x14] ss:$2 sm:$0xf]  ;;  %v1876_v42 = vmax.f32 %v1866_v36, 0.0  ;;  %v1901_v44 = vmax.f32 %v1897_v38, %v1899_v40  ;;  %4548 = vmatprep.subr.bf16.mxu0 %v4695_v62  ;;  %v3484_v38 = vld [vmem:[%s5746_s3 + $0x340] sm:$0xff] }
 0x19c   : > { %v1933_v45 = vld [vmem:[#allocation2 + $0x15] ss:$2 sm:$0xf]  ;;  %v1875_v46 = vmax.f32 %v1865_v39, 0.0  ;;  %4406 = vmatpush3.bf16.msra.mxu1 %v4405_v8  ;;  %v3485_v39 = vld [vmem:[%s5746_s3 + $0x348] sm:$0xff] }
 0x19d   : > { %1886 = vst [vmem:[#allocation2 + $0x48] sm:$0xff] %v1876_v42  ;;  %v5071_v47 = vmax.f32 %v1900_v43, %v1901_v44  ;;  %v1935_v48 = vld [vmem:[#allocation2 + $0x1e] ss:$2 sm:$0xf]  ;;  %v1938_v50 = vmax.f32 %v1931_v41, %v1933_v45  ;;  %4407 = vmatprep.subr.bf16.mxu1 %v4695_v62  ;;  %v3482_v33 = vld [vmem:[%s5746_s3 + $0x330] sm:$0xff]  ;;  %v4552_v41 = vpack.c.bf16 %v3485_v39, %v3484_v38 }
 0x19e   : > { %v1937_v49 = vld [vmem:[#allocation2 + $0x1f] ss:$2 sm:$0xf]  ;;  %1885 = vst [vmem:[#allocation2 + $0x40] sm:$0xff] %v1875_v46  ;;  %v4549_v36 = vpack.c.bf16 %v3483_v34, %v3482_v33  ;;  %v3486_v43 = vld [vmem:[%s5746_s3 + $0x350] sm:$0xff]  ;;  %v3387_v34 = vld [vmem:[%s5746_s3 + $0xc8] sm:$0xff] }
 0x19f   : > { %v1939_v51 = vmax.f32 %v1935_v48, %v1937_v49  ;;  %1904 = vrot.lane.b32.xlu0 %v5071_v47, %s4694_s25  ;;  %v1963_v52 = vld [vmem:[#allocation2 + $0x28] ss:$2 sm:$0xf]  ;;  %v1965_v53 = vld [vmem:[#allocation2 + $0x29] ss:$2 sm:$0xf] }
 0x1a0   : > { %v1970_v57 = vmax.f32 %v1963_v52, %v1965_v53  ;;  %4409 = vmatpush3.bf16.msra.mxu1 %v4408_v15  ;;  %4550 = vmatpush3.bf16.msra.mxu0 %v4549_v36  ;;  %v3487_v44 = vld [vmem:[%s5746_s3 + $0x358] sm:$0xff]  ;;  %v2031_v6 = vld [vmem:[%s5746_s3 + $0x10] sm:$0xff]  ;;  %v3386_v33 = vld [vmem:[%s5746_s3 + $0xc0] sm:$0xff] }
 0x1a1   : > { %v5075_v54 = vmax.f32 %v1938_v50, %v1939_v51  ;;  %v1967_v55 = vld [vmem:[#allocation2 + $0x32] ss:$2 sm:$0xf]  ;;  %v1969_v56 = vld [vmem:[#allocation2 + $0x33] ss:$2 sm:$0xf]  ;;  %4410 = vmatprep.subr.bf16.mxu1 %v4695_v62  ;;  %4551 = vmatprep.subr.bf16.mxu0 %v4695_v62  ;;  %v4555_v46 = vpack.c.bf16 %v3487_v44, %v3486_v43  ;;  %v4417_v14 = vpack.c.bf16 %v2032_v7, %v2031_v6 }
 0x1a2   : > { %v1971_v58 = vmax.f32 %v1967_v55, %v1969_v56  ;;  %v3388_v36 = vld [vmem:[%s5746_s3 + $0xd0] sm:$0xff]  ;;  %v3409_v6 = vld [vmem:[%s5746_s3 + $0x160] sm:$0xff]  ;;  %v3410_v7 = vld [vmem:[%s5746_s3 + $0x168] sm:$0xff] }
 0x1a3   : > { %1942 = vrot.lane.b32.xlu0 %v5075_v54, %s4694_s25  ;;  %v3392_v44 = vld [vmem:[%s5746_s3 + $0xf0] sm:$0xff] }
 0x1a4   : > { %v5079_v59 = vmax.f32 %v1970_v57, %v1971_v58  ;;  %4412 = vmatpush3.bf16.msra.mxu1 %v4411_v25  ;;  %4553 = vmatpush3.bf16.msra.mxu0 %v4552_v41  ;;  %v2037_v25 = vld [vmem:[%s5746_s3 + $0x40] sm:$0xff]  ;;  %v3391_v41 = vld [vmem:[%s5746_s3 + $0xe8] sm:$0xff] }
 0x1a5   : > { %v1995_v16 = vld [vmem:[#allocation2 + $0x3c] ss:$2 sm:$0xf]  ;;  %v1997_v19 = vld [vmem:[#allocation2 + $0x3d] ss:$2 sm:$0xf]  ;;  %4413 = vmatprep.subr.bf16.mxu1 %v4695_v62  ;;  %4554 = vmatprep.subr.bf16.mxu0 %v4695_v62 }
 0x1a6   : > { %1974 = vrot.lane.b32.xlu1 %v5079_v59, %s4694_s25  ;;  %v1999_v20 = vld [vmem:[#allocation2 + $0x46] ss:$2 sm:$0xf]  ;;  %v2001_v22 = vld [vmem:[#allocation2 + $0x47] ss:$2 sm:$0xf]  ;;  %v2002_v30 = vmax.f32 %v1995_v16, %v1997_v19 }
 0x1a7   : > { %v2003_v31 = vmax.f32 %v1999_v20, %v2001_v22  ;;  %v2033_v16 = vld [vmem:[%s5746_s3 + $0x20] sm:$0xff]  ;;  %v2036_v22 = vld [vmem:[%s5746_s3 + $0x38] sm:$0xff] }
 0x1a8   : > { %4556 = vmatpush3.bf16.msra.mxu0 %v4555_v46  ;;  %v4420_v20 = vpack.c.bf16 %v2034_v17, %v2033_v16  ;;  %v4423_v24 = vpack.c.bf16 %v2036_v22, %v2035_v21  ;;  %v3416_v21 = vld [vmem:[%s5746_s3 + $0x180] sm:$0xff]  ;;  %v3417_v22 = vld [vmem:[%s5746_s3 + $0x188] sm:$0xff] }
 0x1a9   : > { %v2004_v35 = vmax.f32 %v2002_v30, %v2003_v31  ;;  %v2039_v30 = vld [vmem:[%s5746_s3 + $0x50] sm:$0xff]  ;;  %v2040_v31 = vld [vmem:[%s5746_s3 + $0x58] sm:$0xff] }
 0x1aa   : > { %v4429_v32 = vpack.c.bf16 %v2040_v31, %v2039_v30  ;;  %v3420_v31 = vld [vmem:[%s5746_s3 + $0x1a0] sm:$0xff] }
 0x211   : > { %v1905_v26 = vpop.permute.xlu0 %1904 }
 0x212   : > { %v1907_v29 = vmax.f32 %v5071_v47, %v1905_v26  ;;  %v2038_v26 = vld [vmem:[%s5746_s3 + $0x48] sm:$0xff] }
 0x214   : > { %1912 = vrot.lane.b32.xlu0 %v1907_v29, %s4694_s25  ;;  %1909 = vrot.lane.b32.xlu1 %v1907_v29, %s4697_s30 }
 0x215   : > { %v1943_v37 = vpop.permute.xlu0 %1942 }
 0x216   : > { %v1945_v40 = vmax.f32 %v5075_v54, %v1943_v37  ;;  %v3389_v37 = vld [vmem:[%s5746_s3 + $0xd8] sm:$0xff] }
 0x217   : > { %v4435_v39 = vpack.c.bf16 %v3389_v37, %v3388_v36  ;;  %v3425_v37 = vld [vmem:[%s5746_s3 + $0x1c8] sm:$0xff] }
 0x218   : > { %1915 = vrot.lane.b32.xlu1 %v1907_v29, %s4699_s15  ;;  %2006 = vrot.lane.b32.xlu0 %v2004_v35, %s4694_s25  ;;  %v1975_v42 = vpop.permute.xlu1 %1974 }
 0x219   : > { %v1977_v45 = vmax.f32 %v5079_v59, %v1975_v42 }
 0x21c   : > { %1947 = vrot.lane.b32.xlu1 %v1945_v40, %s4697_s30  ;;  %1950 = vrot.lane.b32.xlu0 %v1945_v40, %s4694_s25 }
 0x220   : > { %1953 = vrot.lane.b32.xlu1 %v1945_v40, %s4699_s15  ;;  %1979 = vrot.lane.b32.xlu0 %v1977_v45, %s4697_s30 }
 0x224   : > { %1982 = vrot.lane.b32.xlu1 %v1977_v45, %s4694_s25  ;;  %1985 = vrot.lane.b32.xlu0 %v1977_v45, %s4699_s15 }
 0x286   : > { %v1913_v47 = vpop.permute.xlu0 %1912  ;;  %v1910_v48 = vpop.permute.xlu1 %1909 }
 0x287   : > { %v1919_v49 = vsel %vm1918_vm3, 0.0, %v1910_v48  ;;  %v3394_v48 = vld [vmem:[%s5746_s3 + $0x100] sm:$0xff] }
 0x288   : > { %v1921_v50 = vsel %vm1920_vm4, %v1919_v49, %v1907_v29  ;;  %v4426_v29 = vpack.c.bf16 %v2038_v26, %v2037_v25  ;;  %v3395_v49 = vld [vmem:[%s5746_s3 + $0x108] sm:$0xff]  ;;  %v3418_v26 = vld [vmem:[%s5746_s3 + $0x190] sm:$0xff] }
 0x289   : > { %v1923_v51 = vsel %vm1922_vm5, %v1921_v50, %v1913_v47  ;;  %v4444_v50 = vpack.c.bf16 %v3395_v49, %v3394_v48  ;;  %v2885_v25 = vld [vmem:[#allocation3 + $0x1e] sm:$0xff]  ;;  %v3434_v48 = vld [vmem:[%s5746_s3 + $0x1f8] sm:$0xff] }
 0x28a   : > { %v1916_v52 = vpop.permute.xlu1 %1915  ;;  %v2007_v53 = vpop.permute.xlu0 %2006 }
 0x28b   : > { %v1925_v54 = vsel %vm1924_vm6, %v1923_v51, %v1916_v52  ;;  %v5199_v55 = vmax.f32 %v2004_v35, %v2007_v53  ;;  %v4432_v35 = vpack.c.bf16 %v3387_v34, %v3386_v33  ;;  %v3396_v51 = vld [vmem:[%s5746_s3 + $0x110] sm:$0xff]  ;;  %v3397_v52 = vld [vmem:[%s5746_s3 + $0x118] sm:$0xff] }
 0x28c   : > { %v1927_v56 = vsel %vm1926_vm7, %v1925_v54, 0.0  ;;  %v4447_v53 = vpack.c.bf16 %v3397_v52, %v3396_v51  ;;  %v3401_v54 = vld [vmem:[%s5746_s3 + $0x120] sm:$0xff]  ;;  %v3422_v34 = vld [vmem:[%s5746_s3 + $0x1b0] sm:$0xff]  ;;  %v3436_v52 = vld [vmem:[%s5746_s3 + $0x208] sm:$0xff] }
 0x28d   : > { %1929 = vst.msk [vmem:[#allocation3 + $0x7] sm:$0xf] %vm1928_vm8, %v1927_v56  ;;  %2014 = vrot.lane.b32.xlu0 %v5199_v55, %s4694_s25  ;;  %2011 = vrot.lane.b32.xlu1 %v5199_v55, %s4697_s30  ;;  %v3402_v56 = vld [vmem:[%s5746_s3 + $0x128] sm:$0xff]  ;;  %v3435_v51 = vld [vmem:[%s5746_s3 + $0x200] sm:$0xff]  ;;  %s4700_s30 = smov 64  }
 0x28e   : > { %v1948_v57 = vpop.permute.xlu1 %1947  ;;  %v1951_v58 = vpop.permute.xlu0 %1950 }
 0x28f   : > { %v1956_v59 = vsel %vm1918_vm3, 0.0, %v1948_v57  ;;  %v4450_v57 = vpack.c.bf16 %v3402_v56, %v3401_v54  ;;  %v4492_v54 = vpack.c.bf16 %v3436_v52, %v3435_v51  ;;  %v3437_v56 = vld [vmem:[%s5746_s3 + $0x210] sm:$0xff] }
 0x290   : > { %v1957_v63 = vsel %vm1920_vm4, %v1956_v59, %v1945_v40  ;;  %v3390_v40 = vld [vmem:[%s5746_s3 + $0xe0] sm:$0xff]  ;;  %v3404_v59 = vld [vmem:[%s5746_s3 + $0x138] sm:$0xff] }
 0x291   : > { %v1958_v0 = vsel %vm1922_vm5, %v1957_v63, %v1951_v58  ;;  %2017 = vrot.lane.b32.xlu1 %v5199_v55, %s4699_s15  ;;  %v4438_v43 = vpack.c.bf16 %v3391_v41, %v3390_v40  ;;  %v3403_v58 = vld [vmem:[%s5746_s3 + $0x130] sm:$0xff]  ;;  %v3405_v63 = vld [vmem:[%s5746_s3 + $0x140] sm:$0xff]  ;;  %v3427_v40 = vld [vmem:[%s5746_s3 + $0x1d8] sm:$0xff] }
 0x292   : > { %v1954_v1 = vpop.permute.xlu1 %1953  ;;  %v1980_v2 = vpop.permute.xlu0 %1979  ;;  %v4453_v61 = vpack.c.bf16 %v3404_v59, %v3403_v58 }
 0x293   : > { %v1959_v4 = vsel %vm1924_vm6, %v1958_v0, %v1954_v1  ;;  %v1988_v5 = vsel %vm1918_vm3, 0.0, %v1980_v2  ;;  %v3406_v0 = vld [vmem:[%s5746_s3 + $0x148] sm:$0xff] }
 0x294   : > { %v1960_v8 = vsel %vm1926_vm7, %v1959_v4, 0.0  ;;  %v2041_v10 = vld [vmem:[#allocation3 + $0x1] sm:$0xff]  ;;  %v1989_v11 = vsel %vm1920_vm4, %v1988_v5, %v1977_v45  ;;  %v4456_v2 = vpack.c.bf16 %v3406_v0, %v3405_v63 }
 0x295   : > { %1961 = vst.msk [vmem:[#allocation3 + $0xd] sm:$0xf] %vm1928_vm8, %v1960_v8  ;;  %4051 = vmatmul.mubr.msk.f32.vlgmr.msra.gmra.mrb[0].mxu1 %vm1887_vm1, %v2041_v10  ;;  %v2026_v38 = vld [vmem:[#allocation3] sm:$0xff]  ;;  %v3393_v45 = vld [vmem:[%s5746_s3 + $0xf8] sm:$0xff]  ;;  %v4462_v8 = vpack.c.bf16 %v3410_v7, %v3409_v6 }
 0x296   : > { %4415 = vmatpush3.bf16.msra.mxu1 %v4414_v3  ;;  %v1983_v12 = vpop.permute.xlu1 %1982  ;;  %v1986_v13 = vpop.permute.xlu0 %1985  ;;  %4053 = vmatprep.mubr.msk.f32.mxu1 %vm4698_vm2, %v4696_v9  ;;  %v4441_v47 = vpack.c.bf16 %v3393_v45, %v3392_v44  ;;  %v2235_v60 = vld [vmem:[#allocation3 + $0x2] sm:$0xff]  ;;  %v3432_v44 = vld [vmem:[%s5746_s3 + $0x1e8] sm:$0xff] }
 0x297   : > { %v1990_v15 = vsel %vm1922_vm5, %v1989_v11, %v1983_v12  ;;  %4416 = vmatprep.subr.bf16.mxu1 %v4695_v62  ;;  %v3407_v3 = vld [vmem:[%s5746_s3 + $0x150] sm:$0xff]  ;;  %v3408_v4 = vld [vmem:[%s5746_s3 + $0x158] sm:$0xff] }
 0x298   : > { %v1991_v18 = vsel %vm1924_vm6, %v1990_v15, %v1986_v13  ;;  %v4459_v5 = vpack.c.bf16 %v3408_v4, %v3407_v3  ;;  %v3411_v10 = vld [vmem:[%s5746_s3 + $0x170] sm:$0xff]  ;;  %v3412_v11 = vld [vmem:[%s5746_s3 + $0x178] sm:$0xff]  ;;  %v3446_v3 = vld [vmem:[%s5746_s3 + $0x240] sm:$0xff] }
 0x299   : > { %v1992_v19 = vsel %vm1926_vm7, %v1991_v18, 0.0  ;;  %v4465_v12 = vpack.c.bf16 %v3412_v11, %v3411_v10  ;;  %v3441_v0 = vld [vmem:[%s5746_s3 + $0x230] sm:$0xff]  ;;  %v3447_v4 = vld [vmem:[%s5746_s3 + $0x248] sm:$0xff]  ;;  %v3449_v7 = vld [vmem:[%s5746_s3 + $0x258] sm:$0xff] }
 0x29a   : > { %1993 = vst.msk [vmem:[#allocation3 + $0x13] sm:$0xf] %vm1928_vm8, %v1992_v19  ;;  %4418 = vmatpush3.bf16.msra.mxu1 %v4417_v14  ;;  %v3448_v6 = vld [vmem:[%s5746_s3 + $0x250] sm:$0xff]  ;;  %v3450_v10 = vld [vmem:[%s5746_s3 + $0x260] sm:$0xff]  ;;  %v3451_v11 = vld [vmem:[%s5746_s3 + $0x268] sm:$0xff] }
 0x29b   : > { %4419 = vmatprep.subr.bf16.mxu1 %v4695_v62 }
 0x29c   : > { %v2042_v23 = vld [vmem:[#allocation3 + $0x9] sm:$0xff] }
 0x29d   : > { %4054 = vmatmul.mubr.msk.f32.gmra.mrb[2].mxu1 %vm1887_vm1, %v2042_v23  ;;  %v5300_v42 = vld [vmem:[#allocation3 + $0x8] sm:$0xff] }
 0x29e   : > { %4421 = vmatpush3.bf16.msra.mxu1 %v4420_v20  ;;  %4056 = vmatprep.mubr.msk.f32.mxu1 %vm4698_vm2, %v4696_v9  ;;  %v2236_v1 = vld [vmem:[#allocation3 + $0xa] sm:$0xff] }
 0x29f   : > { %4422 = vmatprep.subr.bf16.mxu1 %v4695_v62  ;;  %v2451_v49 = vld [vmem:[#allocation3 + $0x7] sm:$0xff] }
 0x2a1   : > { %v2043_v27 = vld [vmem:[#allocation3 + $0x11] sm:$0xff] }
 0x2a2   : > { %v5260_v28 = vld [vmem:[#allocation3 + $0xe] sm:$0xff]  ;;  %4424 = vmatpush3.bf16.msra.mxu1 %v4423_v24  ;;  %v4468_v24 = vpack.c.bf16 %v3417_v22, %v3416_v21  ;;  %v3462_v22 = vld [vmem:[%s5746_s3 + $0x2a8] sm:$0xff] }
 0x2a3   : > { %4315 = vmatmul.mubr.msk.f32.vlgmr.msra.gmra.mrb[10].mxu0 %vm1887_vm1, %v5260_v28  ;;  %4057 = vmatmul.mubr.msk.f32.gmra.mrb[4].mxu1 %vm1887_vm1, %v2043_v27  ;;  %v5313_v46 = vld [vmem:[#allocation3 + $0x10] sm:$0xff]  ;;  %v3419_v27 = vld [vmem:[%s5746_s3 + $0x198] sm:$0xff] }
 0x2a4   : > { %4425 = vmatprep.subr.bf16.mxu1 %v4695_v62  ;;  %4083 = vmatprep.mubr.msk.f32.mxu1 %vm4698_vm2, %v4696_v9  ;;  %v4471_v30 = vpack.c.bf16 %v3419_v27, %v3418_v26  ;;  %v3461_v21 = vld [vmem:[%s5746_s3 + $0x2a0] sm:$0xff] }
 0x2a5   : > { %4317 = vmatprep.mubr.msk.f32.mxu0 %vm4698_vm2, %v4696_v9  ;;  %v3465_v27 = vld [vmem:[%s5746_s3 + $0x2c0] sm:$0xff] }
 0x2a6   : > { %4427 = vmatpush3.bf16.msra.mxu1 %v4426_v29  ;;  %v2343_v29 = vld [vmem:[#allocation3 + $0x6] sm:$0xff] }
 0x2a7   : > { %4428 = vmatprep.subr.bf16.mxu1 %v4695_v62 }
 0x2aa   : > { %4430 = vmatpush3.bf16.msra.mxu1 %v4429_v32  ;;  %v3421_v32 = vld [vmem:[%s5746_s3 + $0x1a8] sm:$0xff] }
 0x2ab   : > { %4431 = vmatprep.subr.bf16.mxu1 %v4695_v62  ;;  %v4474_v33 = vpack.c.bf16 %v3421_v32, %v3420_v31  ;;  %v3467_v32 = vld [vmem:[%s5746_s3 + $0x2d0] sm:$0xff] }
 0x2ad   : > { %4084 = vmatmul.mubr.msk.f32.vlgmr.msra.gmra.mrb[6].mxu1 %vm1887_vm1, %v2026_v38 }
 0x2ae   : > { %4433 = vmatpush3.bf16.msra.mxu1 %v4432_v35  ;;  %4086 = vmatprep.mubr.msk.f32.mxu1 %vm4698_vm2, %v4696_v9  ;;  %v3423_v35 = vld [vmem:[%s5746_s3 + $0x1b8] sm:$0xff] }
 0x2af   : > { %4434 = vmatprep.subr.bf16.mxu1 %v4695_v62  ;;  %v4477_v36 = vpack.c.bf16 %v3423_v35, %v3422_v34 }
 0x2b1   : > { %4087 = vmatmul.mubr.msk.f32.gmra.mrb[8].mxu1 %vm1887_vm1, %v5300_v42 }
 0x2b2   : > { %4436 = vmatpush3.bf16.msra.mxu1 %v4435_v39  ;;  %4089 = vmatprep.mubr.msk.f32.mxu1 %vm4698_vm2, %v4696_v9  ;;  %v3426_v39 = vld [vmem:[%s5746_s3 + $0x1d0] sm:$0xff] }
 0x2b3   : > { %4437 = vmatprep.subr.bf16.mxu1 %v4695_v62  ;;  %v4483_v41 = vpack.c.bf16 %v3427_v40, %v3426_v39  ;;  %v3471_v39 = vld [vmem:[%s5746_s3 + $0x2f0] sm:$0xff]  ;;  %v3472_v40 = vld [vmem:[%s5746_s3 + $0x2f8] sm:$0xff] }
 0x2b5   : > { %4090 = vmatmul.mubr.msk.f32.gmra.mrb[10].mxu1 %vm1887_vm1, %v5313_v46 }
 0x2b6   : > { %4439 = vmatpush3.bf16.msra.mxu1 %v4438_v43  ;;  %4116 = vmatprep.mubr.msk.f32.mxu1 %vm4698_vm2, %v4696_v9  ;;  %v3431_v43 = vld [vmem:[%s5746_s3 + $0x1e0] sm:$0xff] }
 0x2b7   : > { %4440 = vmatprep.subr.bf16.mxu1 %v4695_v62  ;;  %v4486_v45 = vpack.c.bf16 %v3432_v44, %v3431_v43  ;;  %v4537_v43 = vpack.c.bf16 %v3472_v40, %v3471_v39 }
 0x2ba   : > { %4442 = vmatpush3.bf16.msra.mxu1 %v4441_v47  ;;  %v3433_v47 = vld [vmem:[%s5746_s3 + $0x1f0] sm:$0xff] }
 0x2bb   : > { %4443 = vmatprep.subr.bf16.mxu1 %v4695_v62 }
 0x2be   : > { %4445 = vmatpush3.bf16.msra.mxu1 %v4444_v50  ;;  %v4489_v50 = vpack.c.bf16 %v3434_v48, %v3433_v47  ;;  %v2775_v47 = vld [vmem:[#allocation3 + $0xd] sm:$0xff] }
 0x2bf   : > { %4446 = vmatprep.subr.bf16.mxu1 %v4695_v62 }
 0x2c2   : > { %4448 = vmatpush3.bf16.msra.mxu1 %v4447_v53  ;;  %v2452_v53 = vld [vmem:[#allocation3 + $0xf] sm:$0xff] }
 0x2c3   : > { %4449 = vmatprep.subr.bf16.mxu1 %v4695_v62 }
 0x2c5   : > { %4117 = vmatmul.mubr.msk.f32.vlgmr.msra.gmra.mrb[12].mxu1 %vm1887_vm1, %v2235_v60  ;;  %v3439_v60 = vld [vmem:[%s5746_s3 + $0x220] sm:$0xff] }
 0x2c6   : > { %4119 = vmatprep.mubr.msk.f32.mxu1 %vm4698_vm2, %v4696_v9  ;;  %4451 = vmatpush3.bf16.msra.mxu1 %v4450_v57  ;;  %v3438_v57 = vld [vmem:[%s5746_s3 + $0x218] sm:$0xff] }
 0x2c7   : > { %4452 = vmatprep.subr.bf16.mxu1 %v4695_v62  ;;  %v4495_v59 = vpack.c.bf16 %v3438_v57, %v3437_v56 }
 0x2c9   : > { %4120 = vmatmul.mubr.msk.f32.gmra.mrb[14].mxu1 %vm1887_vm1, %v2236_v1  ;;  %v3442_v1 = vld [vmem:[%s5746_s3 + $0x238] sm:$0xff] }
 0x2ca   : > { %4454 = vmatpush3.bf16.msra.mxu1 %v4453_v61  ;;  %4122 = vmatprep.mubr.msk.f32.mxu1 %vm4698_vm2, %v4696_v9  ;;  %v3440_v61 = vld [vmem:[%s5746_s3 + $0x228] sm:$0xff] }
 0x2cb   : > { %4455 = vmatprep.subr.bf16.mxu1 %v4695_v62  ;;  %v4498_v63 = vpack.c.bf16 %v3440_v61, %v3439_v60 }
 0x2ce   : > { %4457 = vmatpush3.bf16.msra.mxu1 %v4456_v2  ;;  %v4501_v2 = vpack.c.bf16 %v3442_v1, %v3441_v0 }
 0x2cf   : > { %4458 = vmatprep.subr.bf16.mxu1 %v4695_v62 }
 0x2d2   : > { %4460 = vmatpush3.bf16.msra.mxu1 %v4459_v5  ;;  %v4504_v5 = vpack.c.bf16 %v3447_v4, %v3446_v3 }
 0x2d3   : > { %4461 = vmatprep.subr.bf16.mxu1 %v4695_v62 }
 0x2d6   : > { %4463 = vmatpush3.bf16.msra.mxu1 %v4462_v8  ;;  %v4507_v8 = vpack.c.bf16 %v3449_v7, %v3448_v6 }
 0x2d7   : > { %4464 = vmatprep.subr.bf16.mxu1 %v4695_v62 }
 0x2da   : > { %4466 = vmatpush3.bf16.msra.mxu1 %v4465_v12  ;;  %v3452_v12 = vld [vmem:[%s5746_s3 + $0x270] sm:$0xff] }
 0x2db   : > { %4467 = vmatprep.subr.bf16.mxu1 %v4695_v62 }
 0x2ff   : > { %v2012_v13 = vpop.permute.xlu1 %2011  ;;  %v2015_v16 = vpop.permute.xlu0 %2014 }
 0x300   : > { %v2020_v14 = vsel %vm1918_vm3, 0.0, %v2012_v13  ;;  %v3453_v13 = vld [vmem:[%s5746_s3 + $0x278] sm:$0xff] }
 0x301   : > { %v2021_v15 = vsel %vm1920_vm4, %v2020_v14, %v5199_v55 }
 0x302   : > { %v2022_v17 = vsel %vm1922_vm5, %v2021_v15, %v2015_v16  ;;  %v3454_v15 = vld [vmem:[%s5746_s3 + $0x280] sm:$0xff]  ;;  %v3455_v16 = vld [vmem:[%s5746_s3 + $0x288] sm:$0xff] }
 0x303   : > { %v2018_v18 = vpop.permute.xlu1 %2017 }
 0x304   : > { %v2023_v19 = vsel %vm1924_vm6, %v2022_v17, %v2018_v18  ;;  %v4516_v17 = vpack.c.bf16 %v3455_v16, %v3454_v15  ;;  %v3456_v18 = vld [vmem:[%s5746_s3 + $0x290] sm:$0xff] }
 0x305   : > { %v2024_v20 = vsel %vm1926_vm7, %v2023_v19, 0.0  ;;  %v3457_v19 = vld [vmem:[%s5746_s3 + $0x298] sm:$0xff] }
 0x306   : > { %2025 = vst.msk [vmem:[#allocation3 + $0x19] sm:$0xf] %vm1928_vm8, %v2024_v20  ;;  %v4519_v20 = vpack.c.bf16 %v3457_v19, %v3456_v18 }
 0x30d   : > { %v2237_v23 = vld [vmem:[#allocation3 + $0x12] sm:$0xff]  ;;  %v2669_v34 = vld [vmem:[#allocation3 + $0x1c] sm:$0xff] }
 0x30e   : > { %v2884_v55 = vld [vmem:[#allocation3 + $0x16] sm:$0xff]  ;;  %4123 = vmatmul.mubr.msk.f32.gmra.mrb[16].mxu1 %vm1887_vm1, %v2237_v23  ;;  %v4522_v23 = vpack.c.bf16 %v3462_v22, %v3461_v21 }
 0x30f   : > { %4318 = vmatmul.mubr.msk.f32.gmra.mrb[12].mxu0 %vm1887_vm1, %v2884_v55  ;;  %4149 = vmatprep.mubr.msk.f32.mxu1 %vm4698_vm2, %v4696_v9  ;;  %v2453_v58 = vld [vmem:[#allocation3 + $0x17] sm:$0xff] }
 0x310   : > { %4320 = vmatprep.mubr.msk.f32.mxu0 %vm4698_vm2, %v4696_v9  ;;  %v2561_v14 = vld [vmem:[#allocation3 + $0x18] sm:$0xff] }
 0x311   : > { %v2776_v48 = vld [vmem:[#allocation3 + $0x15] sm:$0xff] }
 0x312   : > { %4150 = vmatmul.mubr.msk.f32.vlgmr.msra.gmra.mrb[18].mxu1 %vm1887_vm1, %v2343_v29  ;;  %v3466_v29 = vld [vmem:[%s5746_s3 + $0x2c8] sm:$0xff] }
 0x313   : > { %4321 = vmatmul.mubr.msk.f32.gmra.mrb[14].mxu0 %vm1887_vm1, %v2885_v25  ;;  %4469 = vmatpush3.bf16.msra.mxu1 %v4468_v24  ;;  %v3464_v24 = vld [vmem:[%s5746_s3 + $0x2b8] sm:$0xff]  ;;  %v4528_v31 = vpack.c.bf16 %v3466_v29, %v3465_v27 }
 0x314   : > { %4152 = vmatprep.mubr.msk.f32.mxu1 %vm4698_vm2, %v4696_v9  ;;  %4470 = vmatprep.subr.bf16.mxu1 %v4695_v62  ;;  %v2667_v25 = vld [vmem:[#allocation3 + $0xc] sm:$0xff] }
 0x316   : > { %4153 = vmatmul.mubr.msk.f32.gmra.mrb[20].mxu1 %vm1887_vm1, %v5260_v28  ;;  %v3424_v28 = vld [vmem:[%s5746_s3 + $0x1c0] sm:$0xff] }
 0x317   : > { %4472 = vmatpush3.bf16.msra.mxu1 %v4471_v30  ;;  %4155 = vmatprep.mubr.msk.f32.mxu1 %vm4698_vm2, %v4696_v9  ;;  %v4480_v38 = vpack.c.bf16 %v3425_v37, %v3424_v28  ;;  %v2668_v30 = vld [vmem:[#allocation3 + $0x14] sm:$0xff] }
 0x318   : > { %4473 = vmatprep.subr.bf16.mxu1 %v4695_v62  ;;  %v3470_v28 = vld [vmem:[%s5746_s3 + $0x2e8] sm:$0xff] }
 0x31a   : > { %4156 = vmatmul.mubr.msk.f32.gmra.mrb[22].mxu1 %vm1887_vm1, %v2884_v55  ;;  %v3463_v55 = vld [vmem:[%s5746_s3 + $0x2b0] sm:$0xff] }
 0x31b   : > { %4475 = vmatpush3.bf16.msra.mxu1 %v4474_v33  ;;  %4182 = vmatprep.mubr.msk.f32.mxu1 %vm4698_vm2, %v4696_v9  ;;  %v4525_v26 = vpack.c.bf16 %v3464_v24, %v3463_v55  ;;  %v3468_v33 = vld [vmem:[%s5746_s3 + $0x2d8] sm:$0xff] }
 0x31c   : > { %4476 = vmatprep.subr.bf16.mxu1 %v4695_v62  ;;  %v4531_v35 = vpack.c.bf16 %v3468_v33, %v3467_v32 }
 0x31f   : > { %4478 = vmatpush3.bf16.msra.mxu1 %v4477_v36  ;;  %v3469_v36 = vld [vmem:[%s5746_s3 + $0x2e0] sm:$0xff] }
 0x320   : > { %4479 = vmatprep.subr.bf16.mxu1 %v4695_v62  ;;  %v4534_v37 = vpack.c.bf16 %v3470_v28, %v3469_v36 }
 0x323   : > { %4481 = vmatpush3.bf16.msra.mxu1 %v4480_v38 }
 0x324   : > { %4482 = vmatprep.subr.bf16.mxu1 %v4695_v62 }
 0x327   : > { %4484 = vmatpush3.bf16.msra.mxu1 %v4483_v41 }
 0x328   : > { %4485 = vmatprep.subr.bf16.mxu1 %v4695_v62 }
 0x32a   : > { %4183 = vmatmul.mubr.msk.f32.vlgmr.msra.gmra.mrb[24].mxu1 %vm1887_vm1, %v2451_v49 }
 0x32b   : > { %4487 = vmatpush3.bf16.msra.mxu1 %v4486_v45  ;;  %4185 = vmatprep.mubr.msk.f32.mxu1 %vm4698_vm2, %v4696_v9 }
 0x32c   : > { %4488 = vmatprep.subr.bf16.mxu1 %v4695_v62 }
 0x32e   : > { %4186 = vmatmul.mubr.msk.f32.gmra.mrb[26].mxu1 %vm1887_vm1, %v2452_v53 }
 0x32f   : > { %4490 = vmatpush3.bf16.msra.mxu1 %v4489_v50  ;;  %4188 = vmatprep.mubr.msk.f32.mxu1 %vm4698_vm2, %v4696_v9 }
 0x330   : > { %4491 = vmatprep.subr.bf16.mxu1 %v4695_v62 }
 0x332   : > { %4189 = vmatmul.mubr.msk.f32.gmra.mrb[28].mxu1 %vm1887_vm1, %v2453_v58 }
 0x333   : > { %4493 = vmatpush3.bf16.msra.mxu1 %v4492_v54  ;;  %4215 = vmatprep.mubr.msk.f32.mxu1 %vm4698_vm2, %v4696_v9 }
 0x334   : > { %4494 = vmatprep.subr.bf16.mxu1 %v4695_v62 }
 0x337   : > { %4496 = vmatpush3.bf16.msra.mxu1 %v4495_v59 }
 0x338   : > { %4497 = vmatprep.subr.bf16.mxu1 %v4695_v62 }
 0x33b   : > { %4499 = vmatpush3.bf16.msra.mxu1 %v4498_v63 }
 0x33c   : > { %4500 = vmatprep.subr.bf16.mxu1 %v4695_v62 }
 0x33f   : > { %4502 = vmatpush3.bf16.msra.mxu1 %v4501_v2 }
 0x340   : > { %4503 = vmatprep.subr.bf16.mxu1 %v4695_v62 }
 0x342   : > { %4216 = vmatmul.mubr.msk.f32.vlgmr.msra.gmra.mrb[30].mxu1 %vm1887_vm1, %v5300_v42  ;;  %v4510_v42 = vpack.c.bf16 %v3451_v11, %v3450_v10 }
 0x343   : > { %4505 = vmatpush3.bf16.msra.mxu1 %v4504_v5  ;;  %4218 = vmatprep.mubr.msk.f32.mxu1 %vm4698_vm2, %v4696_v9 }
 0x344   : > { %4506 = vmatprep.subr.bf16.mxu1 %v4695_v62 }
 0x346   : > { %4219 = vmatmul.mubr.msk.f32.gmra.mrb[32].mxu1 %vm1887_vm1, %v5313_v46  ;;  %v4513_v46 = vpack.c.bf16 %v3453_v13, %v3452_v12 }
 0x347   : > { %4508 = vmatpush3.bf16.msra.mxu1 %v4507_v8  ;;  %4221 = vmatprep.mubr.msk.f32.mxu1 %vm4698_vm2, %v4696_v9 }
 0x348   : > { %4509 = vmatprep.subr.bf16.mxu1 %v4695_v62 }
 0x34a   : > { %4222 = vmatmul.mubr.msk.f32.gmra.mrb[34].mxu1 %vm1887_vm1, %v2561_v14 }
 0x34b   : > { %4511 = vmatpush3.bf16.msra.mxu1 %v4510_v42  ;;  %4248 = vmatprep.mubr.msk.f32.mxu1 %vm4698_vm2, %v4696_v9 }
 0x34c   : > { %4512 = vmatprep.subr.bf16.mxu1 %v4695_v62 }
 0x34f   : > { %4514 = vmatpush3.bf16.msra.mxu1 %v4513_v46 }
 0x350   : > { %4515 = vmatprep.subr.bf16.mxu1 %v4695_v62 }
 0x353   : > { %4517 = vmatpush3.bf16.msra.mxu1 %v4516_v17 }
 0x354   : > { %4518 = vmatprep.subr.bf16.mxu1 %v4695_v62 }
 0x357   : > { %4520 = vmatpush3.bf16.msra.mxu1 %v4519_v20 }
 0x358   : > { %4521 = vmatprep.subr.bf16.mxu1 %v4695_v62 }
 0x35a   : > { %4249 = vmatmul.mubr.msk.f32.vlgmr.msra.gmra.mrb[36].mxu1 %vm1887_vm1, %v2667_v25 }
 0x35b   : > { %4523 = vmatpush3.bf16.msra.mxu1 %v4522_v23  ;;  %4251 = vmatprep.mubr.msk.f32.mxu1 %vm4698_vm2, %v4696_v9 }
 0x35c   : > { %4524 = vmatprep.subr.bf16.mxu1 %v4695_v62 }
 0x35e   : > { %4252 = vmatmul.mubr.msk.f32.gmra.mrb[38].mxu1 %vm1887_vm1, %v2668_v30 }
 0x35f   : > { %4526 = vmatpush3.bf16.msra.mxu1 %v4525_v26  ;;  %4254 = vmatprep.mubr.msk.f32.mxu1 %vm4698_vm2, %v4696_v9 }
 0x360   : > { %4527 = vmatprep.subr.bf16.mxu1 %v4695_v62 }
 0x362   : > { %4255 = vmatmul.mubr.msk.f32.gmra.mrb[40].mxu1 %vm1887_vm1, %v2669_v34 }
 0x363   : > { %4529 = vmatpush3.bf16.msra.mxu1 %v4528_v31  ;;  %4281 = vmatprep.mubr.msk.f32.mxu1 %vm4698_vm2, %v4696_v9 }
 0x364   : > { %4530 = vmatprep.subr.bf16.mxu1 %v4695_v62 }
 0x367   : > { %4532 = vmatpush3.bf16.msra.mxu1 %v4531_v35 }
 0x368   : > { %v2132_v38 = vpop.f32.mrb[0].mxu1  ;;  %4533 = vmatprep.subr.bf16.mxu1 %v4695_v62 }
 0x369   : > { %v4052_v41 = vpop.f32.mrb[1].mxu1 }
 0x36b   : > { %4535 = vmatpush3.bf16.msra.mxu1 %v4534_v37 }
 0x36c   : > { %4536 = vmatprep.subr.bf16.mxu1 %v4695_v62  ;;  %v2777_v62 = vld [vmem:[#allocation3 + $0x1d] sm:$0xff] }
 0x36f   : > { %4538 = vmatpush3.bf16.msra.mxu1 %v4537_v43 }
 0x370   : > { %v2137_v44 = vpop.f32.mrb[2].mxu1 }
 0x371   : > { %v4055_v45 = vpop.f32.mrb[3].mxu1 }
 0x372   : > { %4282 = vmatmul.mubr.msk.f32.vlgmr.msra.gmra.mrb[42].mxu1 %vm1887_vm1, %v2775_v47 }
 0x373   : > { %4284 = vmatprep.mubr.msk.f32.mxu1 %vm4698_vm2, %v4696_v9 }
 0x376   : > { %v5606_v49 = vpop.f32.mrb[10].mxu0  ;;  %v2142_v50 = vpop.f32.mrb[4].mxu1  ;;  %4285 = vmatmul.mubr.msk.f32.gmra.mrb[44].mxu1 %vm1887_vm1, %v2776_v48 }
 0x377   : > { %v4316_v51 = vpop.f32.mrb[11].mxu0  ;;  %v4058_v52 = vpop.f32.mrb[5].mxu1  ;;  %4287 = vmatprep.mubr.msk.f32.mxu1 %vm4698_vm2, %v4696_v9 }
 0x378   : > { %v3491_v52 = vld [vmem:[%s5747_s4] ss:$0 sm:$0xff] }
 0x37a   : > { %4288 = vmatmul.mubr.msk.f32.gmra.mrb[46].mxu1 %vm1887_vm1, %v2777_v62 }
 0x380   : > { %v2221_v53 = vpop.f32.mrb[6].mxu1 }
 0x381   : > { %v2222_v54 = vadd.f32 %v2221_v53, %v2132_v38  ;;  %v4085_v56 = vpop.f32.mrb[7].mxu1 }
 0x384   : > { %v2226_v57 = vpop.f32.mrb[8].mxu1 }
 0x385   : > { %v2227_v58 = vadd.f32 %v2226_v57, %v2137_v44  ;;  %v4088_v59 = vpop.f32.mrb[9].mxu1 }
 0x388   : > { %v2231_v60 = vpop.f32.mrb[10].mxu1 }
 0x389   : > { %v2232_v61 = vadd.f32 %v2231_v60, %v2142_v50  ;;  %v4091_v63 = vpop.f32.mrb[11].mxu1 }
 0x398   : > { %v2326_v0 = vpop.f32.mrb[12].mxu1 }
 0x399   : > { %v2340_v1 = vadd.f32 %v2326_v0, %v2222_v54  ;;  %v4118_v2 = vpop.f32.mrb[13].mxu1 }
 0x39c   : > { %v2331_v3 = vpop.f32.mrb[14].mxu1 }
 0x39d   : > { %v2341_v4 = vadd.f32 %v2331_v3, %v2227_v58  ;;  %v4121_v5 = vpop.f32.mrb[15].mxu1 }
 0x3e1   : > { %v2336_v6 = vpop.f32.mrb[16].mxu1 }
 0x3e2   : > { %v2979_v9 = vpop.f32.mrb[12].mxu0  ;;  %v2342_v7 = vadd.f32 %v2336_v6, %v2232_v61  ;;  %v4124_v8 = vpop.f32.mrb[17].mxu1 }
 0x3e3   : > { %v4319_v10 = vpop.f32.mrb[13].mxu0 }
 0x3e5   : > { %v2434_v11 = vpop.f32.mrb[18].mxu1 }
 0x3e6   : > { %v2984_v42 = vpop.f32.mrb[14].mxu0  ;;  %v2448_v12 = vadd.f32 %v2434_v11, %v2340_v1  ;;  %v4151_v13 = vpop.f32.mrb[19].mxu1 }
 0x3e7   : > { %v4322_v14 = vpop.f32.mrb[15].mxu0 }
 0x3e9   : > { %v2439_v46 = vpop.f32.mrb[20].mxu1 }
 0x3ea   : > { %v2449_v15 = vadd.f32 %v2439_v46, %v2341_v4  ;;  %v4154_v16 = vpop.f32.mrb[21].mxu1 }
 0x3eb   : > { %v3086_v16 = vld [vmem:[%s5748_s5 + $0x88] sm:$0xff] }
 0x3ed   : > { %v2444_v17 = vpop.f32.mrb[22].mxu1 }
 0x3ee   : > { %v2450_v18 = vadd.f32 %v2444_v17, %v2342_v7  ;;  %v4157_v19 = vpop.f32.mrb[23].mxu1  ;;  %v3069_v17 = vld [vmem:[%s5748_s5] sm:$0xff] }
 0x3fd   : > { %v2542_v20 = vpop.f32.mrb[24].mxu1 }
 0x3fe   : > { %v2556_v21 = vadd.f32 %v2542_v20, %v2448_v12  ;;  %v4184_v22 = vpop.f32.mrb[25].mxu1  ;;  %v3070_v20 = vld [vmem:[%s5748_s5 + $0x8] sm:$0xff] }
 0x3ff   : > { %v3088_v22 = vld [vmem:[%s5748_s5 + $0x98] sm:$0xff] }
 0x401   : > { %v2547_v23 = vpop.f32.mrb[26].mxu1 }
 0x402   : > { %v2557_v55 = vadd.f32 %v2547_v23, %v2449_v15  ;;  %v4187_v24 = vpop.f32.mrb[27].mxu1  ;;  %v3085_v15 = vld [vmem:[%s5748_s5 + $0x80] sm:$0xff]  ;;  %v4559_v23 = vpack.c.bf16 %v3070_v20, %v3069_v17 }
 0x403   : > { %v4557_v19 = vpack.c.bf16 %v3086_v16, %v3085_v15  ;;  %v3071_v24 = vld [vmem:[%s5748_s5 + $0x10] sm:$0xff]  ;;  %v3171_v20 = vld [vmem:[%s5749_s6] sm:$0x1] }
 0x405   : > { %v2552_v25 = vpop.f32.mrb[28].mxu1  ;;  %4558 = vmatprep.subr.bf16.mxu1 %v4557_v19 }
 0x406   : > { %v2558_v26 = vadd.f32 %v2552_v25, %v2450_v18  ;;  %v4190_v27 = vpop.f32.mrb[29].mxu1  ;;  %v3072_v25 = vld [vmem:[%s5748_s5 + $0x18] sm:$0xff]  ;;  %4560 = vmatpush3.bf16.msra.mxu1 %v4559_v23  ;;  %v3174_v23 = vld [vmem:[%s5750_s7] sm:$0x1] }
 0x407   : > { %v3090_v27 = vld [vmem:[%s5748_s5 + $0xa8] sm:$0xff] }
 0x415   : > { %v2650_v29 = vpop.f32.mrb[30].mxu1 }
 0x416   : > { %v2664_v30 = vadd.f32 %v2650_v29, %v2556_v21  ;;  %v4217_v31 = vpop.f32.mrb[31].mxu1  ;;  %v3087_v21 = vld [vmem:[%s5748_s5 + $0x90] sm:$0xff]  ;;  %v4563_v29 = vpack.c.bf16 %v3072_v25, %v3071_v24 }
 0x417   : > { %v3073_v31 = vld [vmem:[%s5748_s5 + $0x20] sm:$0xff] }
 0x419   : > { %v2655_v32 = vpop.f32.mrb[32].mxu1 }
 0x41a   : > { %v2665_v33 = vadd.f32 %v2655_v32, %v2557_v55  ;;  %v4220_v34 = vpop.f32.mrb[33].mxu1  ;;  %v4561_v55 = vpack.c.bf16 %v3088_v22, %v3087_v21  ;;  %v3074_v32 = vld [vmem:[%s5748_s5 + $0x28] sm:$0xff] }
 0x41b   : > { %v3092_v34 = vld [vmem:[%s5748_s5 + $0xb8] sm:$0xff] }
 0x41c   : > { %4562 = vmatprep.subr.bf16.mxu1 %v4561_v55 }
 0x41d   : > { %v2660_v35 = vpop.f32.mrb[34].mxu1  ;;  %4564 = vmatpush3.bf16.msra.mxu1 %v4563_v29 }
 0x41e   : > { %v2666_v36 = vadd.f32 %v2660_v35, %v2558_v26  ;;  %v4223_v28 = vpop.f32.mrb[35].mxu1  ;;  %v3089_v26 = vld [vmem:[%s5748_s5 + $0xa0] sm:$0xff]  ;;  %v4567_v35 = vpack.c.bf16 %v3074_v32, %v3073_v31 }
 0x41f   : > { %v3075_v28 = vld [vmem:[%s5748_s5 + $0x30] sm:$0xff] }
 0x42d   : > { %v2758_v37 = vpop.f32.mrb[36].mxu1 }
 0x42e   : > { %v2772_v38 = vadd.f32 %v2758_v37, %v2664_v30  ;;  %v4250_v39 = vpop.f32.mrb[37].mxu1  ;;  %v4565_v30 = vpack.c.bf16 %v3090_v27, %v3089_v26  ;;  %v3076_v37 = vld [vmem:[%s5748_s5 + $0x38] sm:$0xff]  ;;  %v3180_v26 = vld [vmem:[#allocation5] sm:$0x1] }
 0x42f   : > { %v3094_v39 = vld [vmem:[%s5748_s5 + $0xc8] sm:$0xff] }
 0x430   : > { %4566 = vmatprep.subr.bf16.mxu1 %v4565_v30 }
 0x431   : > { %v2763_v40 = vpop.f32.mrb[38].mxu1  ;;  %4568 = vmatpush3.bf16.msra.mxu1 %v4567_v35 }
 0x432   : > { %v2773_v41 = vadd.f32 %v2763_v40, %v2665_v33  ;;  %v4253_v43 = vpop.f32.mrb[39].mxu1  ;;  %v3091_v33 = vld [vmem:[%s5748_s5 + $0xb0] sm:$0xff]  ;;  %v4571_v40 = vpack.c.bf16 %v3076_v37, %v3075_v28 }
 0x433   : > { %v3077_v43 = vld [vmem:[%s5748_s5 + $0x40] sm:$0xff] }
 0x435   : > { %v2768_v44 = vpop.f32.mrb[40].mxu1 }
 0x436   : > { %v2774_v45 = vadd.f32 %v2768_v44, %v2666_v36  ;;  %v4256_v47 = vpop.f32.mrb[41].mxu1  ;;  %v4569_v36 = vpack.c.bf16 %v3092_v34, %v3091_v33  ;;  %v3078_v44 = vld [vmem:[%s5748_s5 + $0x48] sm:$0xff] }
 0x437   : > { %v3095_v47 = vld [vmem:[%s5748_s5 + $0xd0] sm:$0xff] }
 0x438   : > { %4570 = vmatprep.subr.bf16.mxu1 %v4569_v36 }
 0x439   : > { %4572 = vmatpush3.bf16.msra.mxu1 %v4571_v40 }
 0x445   : > { %v2866_v48 = vpop.f32.mrb[42].mxu1 }
 0x446   : > { %v2880_v50 = vadd.f32 %v2866_v48, %v2772_v38  ;;  %v4283_v51 = vpop.f32.mrb[43].mxu1  ;;  %v3093_v38 = vld [vmem:[%s5748_s5 + $0xc0] sm:$0xff]  ;;  %v3096_v48 = vld [vmem:[%s5748_s5 + $0xd8] sm:$0xff] }
 0x447   : > { %v4577_v51 = vpack.c.bf16 %v3096_v48, %v3095_v47 }
 0x448   : > { %v2988_v62 = vadd.f32 %v5606_v49, %v2880_v50  ;;  %v3079_v50 = vld [vmem:[%s5748_s5 + $0x50] sm:$0xff] }
 0x449   : > { %v2871_v53 = vpop.f32.mrb[44].mxu1 }
 0x44a   : > { %v2998_v54 = vadd.f32 %v3491_v52, %v2988_v62  ;;  %v2881_v56 = vadd.f32 %v2871_v53, %v2773_v41  ;;  %v4286_v57 = vpop.f32.mrb[45].mxu1  ;;  %v4573_v41 = vpack.c.bf16 %v3094_v39, %v3093_v38  ;;  %v3097_v53 = vld [vmem:[%s5748_s5 + $0xe0] sm:$0xff] }
 0x44c   : > { %v3001_v58 = vmax.f32 %v2998_v54, 0.0  ;;  %v2989_v59 = vadd.f32 %v2979_v9, %v2881_v56  ;;  %4574 = vmatprep.subr.bf16.mxu1 %v4573_v41  ;;  %v3098_v54 = vld [vmem:[%s5748_s5 + $0xe8] sm:$0xff]  ;;  %v3081_v56 = vld [vmem:[%s5748_s5 + $0x60] sm:$0xff] }
 0x44d   : > { %v2876_v60 = vpop.f32.mrb[46].mxu1  ;;  %v4581_v57 = vpack.c.bf16 %v3098_v54, %v3097_v53 }
 0x44e   : > { %3004 = vst [vmem:[#allocation4] sm:$0xff] %v3001_v58  ;;  %v2999_v61 = vadd.f32 %v3491_v52, %v2989_v59  ;;  %v2882_v63 = vadd.f32 %v2876_v60, %v2774_v45  ;;  %v4289_v0 = vpop.f32.mrb[47].mxu1  ;;  %v4575_v45 = vpack.c.bf16 %v3078_v44, %v3077_v43  ;;  %v3082_v58 = vld [vmem:[%s5748_s5 + $0x68] sm:$0xff]  ;;  %v3099_v60 = vld [vmem:[%s5748_s5 + $0xf0] sm:$0xff] }
 0x44f   : > { %v4583_v59 = vpack.c.bf16 %v3082_v58, %v3081_v56 }
 0x450   : > { %v3002_v1 = vmax.f32 %v2999_v61, 0.0  ;;  %v2990_v2 = vadd.f32 %v2984_v42, %v2882_v63  ;;  %4576 = vmatpush3.bf16.msra.mxu1 %v4575_v45  ;;  %v3100_v61 = vld [vmem:[%s5748_s5 + $0xf8] sm:$0xff]  ;;  %v3083_v63 = vld [vmem:[%s5748_s5 + $0x70] sm:$0xff] }
 0x451   : > { %4578 = vmatprep.subr.bf16.mxu1 %v4577_v51  ;;  %v4585_v0 = vpack.c.bf16 %v3100_v61, %v3099_v60 }
 0x452   : > { %3005 = vst [vmem:[#allocation4 + $0x8] sm:$0xff] %v3002_v1  ;;  %v3000_v3 = vadd.f32 %v3491_v52, %v2990_v2  ;;  %v3080_v52 = vld [vmem:[%s5748_s5 + $0x58] sm:$0xff] }
 0x453   : > { %v4579_v62 = vpack.c.bf16 %v3080_v52, %v3079_v50  ;;  %v3084_v1 = vld [vmem:[%s5748_s5 + $0x78] sm:$0xff] }
 0x454   : > { %v3003_v4 = vmax.f32 %v3000_v3, 0.0  ;;  %v4587_v3 = vpack.c.bf16 %v3084_v1, %v3083_v63 }
 0x455   : > { %v3007_v5 = vld [vmem:[#allocation4] ss:$2 sm:$0x3]  ;;  %v3009_v6 = vld [vmem:[#allocation4 + $0x1] ss:$2 sm:$0x3]  ;;  %4580 = vmatpush3.bf16.msra.mxu1 %v4579_v62 }
 0x456   : > { %3006 = vst [vmem:[#allocation4 + $0x10] sm:$0xff] %v3003_v4  ;;  %v3014_v8 = vmax.f32 %v3007_v5, %v3009_v6  ;;  %4582 = vmatprep.subr.bf16.mxu1 %v4581_v57 }
 0x459   : > { %v3011_v49 = vld [vmem:[#allocation4 + $0x6] ss:$2 sm:$0x3]  ;;  %v3013_v7 = vld [vmem:[#allocation4 + $0x7] ss:$2 sm:$0x3]  ;;  %4584 = vmatpush3.bf16.msra.mxu1 %v4583_v59 }
 0x45a   : > { %v3015_v10 = vmax.f32 %v3011_v49, %v3013_v7  ;;  %v3023_v11 = vld [vmem:[#allocation4 + $0xc] ss:$2 sm:$0x3]  ;;  %v3025_v12 = vld [vmem:[#allocation4 + $0xd] ss:$2 sm:$0x3]  ;;  %4586 = vmatprep.subr.bf16.mxu1 %v4585_v0 }
 0x45b   : > { %v3030_v42 = vmax.f32 %v3023_v11, %v3025_v12 }
 0x45c   : > { %v5616_v9 = vmax.f32 %v3014_v8, %v3015_v10 }
 0x45d   : > { %v3027_v13 = vld [vmem:[#allocation4 + $0x12] ss:$2 sm:$0x3]  ;;  %v3029_v14 = vld [vmem:[#allocation4 + $0x13] ss:$2 sm:$0x3]  ;;  %4588 = vmatpush3.bf16.msra.mxu1 %v4587_v3 }
 0x45e   : > { %3018 = vrot.lane.b32.xlu1 %v5616_v9, %s4699_s15  ;;  %v3031_v46 = vmax.f32 %v3027_v13, %v3029_v14 }
 0x460   : > { %v5629_v18 = vmax.f32 %v3030_v42, %v3031_v46 }
 0x462   : > { %3034 = vrot.lane.b32.xlu0 %v5629_v18, %s4699_s15 }
 0x4d0   : > { %v3019_v2 = vpop.permute.xlu1 %3018 }
 0x4d1   : > { %v3021_v4 = vmax.f32 %v5616_v9, %v3019_v2 }
 0x4d3   : > { %3039 = vrot.lane.b32.xlu1 %v3021_v4, %s4699_s15  ;;  %v3042_v49 = vrot.slane %v3021_v4, 1 }
 0x4d4   : > { %v3035_v5 = vpop.permute.xlu0 %3034 }
 0x4d5   : > { %v3037_v6 = vmax.f32 %v5629_v18, %v3035_v5 }
 0x4d7   : > { %3043 = vrot.lane.b32.xlu1 %v3042_v49, %s4700_s30  ;;  %3050 = vrot.lane.b32.xlu0 %v3037_v6, %s4699_s15  ;;  %v3053_v7 = vrot.slane %v3037_v6, 1 }
 0x4db   : > { %3046 = vrot.lane.b32.xlu1 %v3042_v49, %s4701_s10  ;;  %3054 = vrot.lane.b32.xlu0 %v3053_v7, %s4700_s30 }
 0x4df   : > { %3057 = vrot.lane.b32.xlu0 %v3053_v7, %s4701_s10 }
 0x545   : > { %v3040_v8 = vpop.permute.xlu1 %3039 }
 0x546   : > { %v3060_v14 = vsel %vm1920_vm4, %v3021_v4, %v3040_v8 }
 0x549   : > { %v3051_v10 = vpop.permute.xlu0 %3050  ;;  %v3044_v11 = vpop.permute.xlu1 %3043 }
 0x54a   : > { %v3063_v9 = vsel %vm1920_vm4, %v3037_v6, %v3051_v10  ;;  %v3061_v15 = vsel %vm1924_vm6, %v3060_v14, %v3044_v11 }
 0x54d   : > { %v3055_v12 = vpop.permute.xlu0 %3054  ;;  %v3047_v13 = vpop.permute.xlu1 %3046 }
 0x54e   : > { %v3064_v42 = vsel %vm1924_vm6, %v3063_v9, %v3055_v12  ;;  %v3062_v17 = vsel %vm1887_vm1, %v3061_v15, %v3047_v13 }
 0x551   : > { %v3058_v46 = vpop.permute.xlu0 %3057 }
 0x552   : > { %v3065_v16 = vsel %vm1887_vm1, %v3064_v42, %v3058_v46 }
 0x553   : > { %3492 = vmatprep.mubr.msk.f32.mxu1 %vm3066_vm9, %v3065_v16 }
 0x554   : > { %3493 = vmatmul.mubr.msk.f32.vlgmr.msra.gmra.mrb[48].mxu1 %vm3066_vm9, %v3062_v17 }
 0x627   : > { %v3798_v18 = vpop.f32.mrb[48].mxu1 }
 0x628   : > { %v3799_v19 = vpop.f32.mrb[49].mxu1 }
 0x629   : > { %v3800_v21 = vadd.f32 %v3799_v19, %v3798_v18 }
 0x62b   : > { %v3172_v22 = vadd.f32 %v3800_v21, %v3171_v20 }
 0x62d   : > { %v3173_v55 = vmax.f32 %v3172_v22, 0.0 }
 0x62f   : > { %v3175_v24 = vmul.f32 %v3174_v23, %v3173_v55 }
 0x631   : > { %v3177_v25 = vsel %vm3176_vm10, %v3175_v24, 0.0 }
 0x632   : > { %3178 = vadd.xlane.f32.xlu0 %v3177_v25 }
 0x6bf   : > { %v3179_v27 = vpop.xlane.xlu0 %3178 }
 0x6c0   : > { %v3181_v29 = vadd.f32 %v3180_v26, %v3179_v27 }
 0x6c2   : > { %3183 = vst.msk [vmem:[%s330_s18] sm:$0x1] %vm3182_vm11, %v3181_v29 }
 0x6c3 PF: > { %s21_s11 = sadd.s32 1, %s4692_s11  }
 0x6c4   : > { %p18_p4 = scmp.ge.s32.totalorder %s21_s11, 4  }
 0x6c6   :  { %20 = sbr.rel (!%p18_p4) target bundleno = 3 (0x3), region = 124 }

</bundles_post_ra>
